<compile_context>
chip_gen: v5e
topology: v5e:2x2
jax: 0.10.0
libtpu: 0.0.40
codegen_flags: <defaults>
</compile_context>

<pallas_src>
import functools

import jax
import jax.numpy as jnp
from jax.experimental import pallas as pl
from jax.experimental.pallas import tpu as pltpu


def _round_up(v, mult):
    return ((v + mult - 1) // mult) * mult


def _vmem_budget_bytes():
    """Per-generation VMEM budget (~75% of physical capacity)."""
    cap = 64 * 1024 * 1024          # conservative fallback (v7x physical size)
    try:
        cap = int(getattr(pltpu.get_tpu_info(), "vmem_capacity_bytes", cap))
    except Exception:
        pass
    return max(int(cap * 3 // 4), 32 * 1024 * 1024)


def _gcn_fused_kernel(adj_in, x_hbm, w_ref, b_ref, dis_ref, o_ref, *scratch,
                      num_layers, row_tile, adj_resident):
    """Fused multi-layer GCN.

    adj_in:  resident: full [N, N] bf16 adjacency ref in HBM (pl.ANY)
             streaming: [TM, N] bf16 adjacency row strip in VMEM
    x_hbm:   [N, F]  bf16 padded input features in HBM (pl.ANY), copied once
    w_ref:   [1, F, F] bf16 this layer's padded weight (pre-transposed)
    b_ref:   [1, 1, F] f32 this layer's padded bias
    dis_ref: [N, 1]  f32 deg^-1/2 of (A + I)
    o_ref:   [TM, F] f32 output row strip (written only on the last layer)
    scratch: h [N,F] bf16 resident features, u [N,F] bf16 = d*(h@W),
             (adj_v [N,N] bf16 if resident), DMA semaphores (2,)
    """
    if adj_resident:
        h_ref, u_ref, adj_v, sem = scratch
    else:
        h_ref, u_ref, sem = scratch
        adj_v = None

    l = pl.program_id(0)   # layer index      (sequential dependence)
    m = pl.program_id(1)   # row-strip index  (shares full-feature scratch)
    first = jnp.logical_and(l == 0, m == 0)

    # One-time init: stream the inputs into resident VMEM scratches.  The
    # (large) adjacency copy is started here and only waited on just before
    # the first propagation, so it overlaps the layer-0 feature transform.
    @pl.when(first)
    def _():
        if adj_resident:
            pltpu.make_async_copy(adj_in, adj_v, sem.at[1]).start()
        cp_x = pltpu.make_async_copy(x_hbm, h_ref, sem.at[0])
        cp_x.start()
        cp_x.wait()

    # Once per layer (strip 0): feature transform for ALL nodes, chunked so
    # temporaries stay bounded at [row_tile, F].
    #   u = deg^-1/2 * (h @ W_l)    (bf16 x bf16 -> f32 on the MXU)
    @pl.when(m == 0)
    def _():
        w_bf = w_ref[0]                                      # [F, F] bf16
        n_chunks = h_ref.shape[0] // row_tile

        def chunk(c, carry):
            r0 = pl.multiple_of(c * row_tile, row_tile)
            z = jnp.dot(h_ref[pl.ds(r0, row_tile), :], w_bf,
                        preferred_element_type=jnp.float32)
            u_ref[pl.ds(r0, row_tile), :] = (
                dis_ref[pl.ds(r0, row_tile), :] * z).astype(jnp.bfloat16)
            return carry

        jax.lax.fori_loop(0, n_chunks, chunk, 0, unroll=n_chunks <= 8)

    # Adjacency DMA completes (once); overlapped with the transform above.
    if adj_resident:
        @pl.when(first)
        def _():
            pltpu.make_async_copy(adj_in, adj_v, sem.at[1]).wait()

    # Every step: propagate one adjacency row strip.
    #   D^-1/2 (A + I) D^-1/2 (h W) + b  ==  d * (A @ u + u) + b
    row = pl.multiple_of(m * row_tile, row_tile)
    a_strip = adj_v[pl.ds(row, row_tile), :] if adj_resident else adj_in[...]
    agg = jnp.dot(a_strip, u_ref[...],
                  preferred_element_type=jnp.float32)        # [TM, F] f32
    d_strip = dis_ref[pl.ds(row, row_tile), :]               # [TM, 1]  f32
    u_strip = u_ref[pl.ds(row, row_tile), :].astype(jnp.float32)
    out = d_strip * (agg + u_strip) + b_ref[0]

    # Hidden layers: ReLU (dropout is identity in eval mode), feed the next
    # layer through the resident bf16 feature scratch.  Hazard free: h is
    # only read in the m == 0 transform, which has already run for this layer.
    @pl.when(l < num_layers - 1)
    def _():
        h_ref[pl.ds(row, row_tile), :] = (
            jnp.maximum(out, 0.0).astype(jnp.bfloat16))

    # Final layer: write the output strip (earlier layers skip the store).
    @pl.when(l == num_layers - 1)
    def _():
        o_ref[...] = out.astype(o_ref.dtype)


def gcn_forward(x, adj, params, *, row_tile=None):
    """Full GCN forward in one fused Pallas call.

    x:      [N, Fin] f32 node features
    adj:    [N, N]   dense {0,1} aggregation matrix (adj_t), no self loops
    params: list of (W [Fin, Fout] pre-transposed, b [Fout]) per layer
    """
    n, f_in = x.shape
    num_layers = len(params)
    out_channels = params[-1][0].shape[1]

    # Lane-dense padded feature slab width shared by all layers.
    f_pad = _round_up(max([f_in] + [w.shape[1] for w, _ in params]), 128)

    if row_tile is None:
        row_tile = n
        for cand in (512, 256, 128, 64, 32, 16):
            if cand <= n and n % cand == 0:
                row_tile = cand
                break
    assert n % row_tile == 0 and (row_tile == n or row_tile % 16 == 0)

    budget = _vmem_budget_bytes()

    def vmem_estimate(resident, rt):
        b = 2 * n * f_pad * 2                        # h + u bf16 scratches
        b += 2 * _round_up(n, 8) * 128 * 4           # (N,1) deg^-1/2, tiled
        b += 2 * (f_pad * f_pad * 2 + 8 * f_pad * 4)  # W / b double buffers
        b += 2 * rt * f_pad * 4                      # output double buffer
        b += 8 * rt * f_pad * 4                      # in-body f32 temporaries
        b += n * n * 2 if resident else 2 * rt * n * 2
        return b

    adj_resident = vmem_estimate(True, row_tile) <= budget
    if not adj_resident:
        # Streaming fallback for large N: shrink the strip until it fits.
        while (row_tile > 16 and n % (row_tile // 2) == 0
               and vmem_estimate(False, row_tile) > budget):
            row_tile //= 2
    num_strips = n // row_tile

    # deg^-1/2 of (A + I): tiny [N,1] vector; the NxN matrix itself is never
    # normalized or re-materialized in HBM.
    deg = jnp.sum(adj.astype(jnp.float32), axis=1, keepdims=True) + 1.0
    d_is = jax.lax.rsqrt(deg)

    # bf16 adjacency / features / weights (exact for {0,1} adjacency; features
    # and weights were only ever consumed through bf16 MXU casts anyway).
    adj_bf = adj.astype(jnp.bfloat16)
    x_pad = jnp.zeros((n, f_pad), jnp.bfloat16).at[:, :f_in].set(
        x.astype(jnp.bfloat16))
    w_stack = jnp.zeros((num_layers, f_pad, f_pad), jnp.bfloat16)
    b_stack = jnp.zeros((num_layers, 1, f_pad), jnp.float32)
    for li, (w, b) in enumerate(params):
        fi, fo = w.shape
        w_stack = w_stack.at[li, :fi, :fo].set(w.astype(jnp.bfloat16))
        b_stack = b_stack.at[li, 0, :fo].set(b.astype(jnp.float32))

    kernel = functools.partial(_gcn_fused_kernel, num_layers=num_layers,
                               row_tile=row_tile, adj_resident=adj_resident)

    in_specs = [
        # adjacency: resident (manual one-shot DMA) or streamed row strips
        (pl.BlockSpec(memory_space=pl.ANY) if adj_resident
         else pl.BlockSpec((row_tile, n), lambda l, m: (m, 0))),
        # padded input features: copied once into the h scratch, never resident
        pl.BlockSpec(memory_space=pl.ANY),
        # per-layer padded weight / bias slabs (double buffered across layers)
        pl.BlockSpec((1, f_pad, f_pad), lambda l, m: (l, 0, 0)),
        pl.BlockSpec((1, 1, f_pad), lambda l, m: (l, 0, 0)),
        # deg^-1/2 vector, constant index -> fetched once
        pl.BlockSpec((n, 1), lambda l, m: (0, 0)),
    ]
    scratch_shapes = [
        pltpu.VMEM((n, f_pad), jnp.bfloat16),    # resident node features h
        pltpu.VMEM((n, f_pad), jnp.bfloat16),    # u = deg^-1/2 * (h @ W)
    ]
    if adj_resident:
        scratch_shapes.append(pltpu.VMEM((n, n), jnp.bfloat16))
    scratch_shapes.append(pltpu.SemaphoreType.DMA((2,)))

    out_pad = pl.pallas_call(
        kernel,
        out_shape=jax.ShapeDtypeStruct((n, f_pad), jnp.float32),
        grid_spec=pltpu.PrefetchScalarGridSpec(
            num_scalar_prefetch=0,
            grid=(num_layers, num_strips),
            in_specs=in_specs,
            out_specs=pl.BlockSpec((row_tile, f_pad), lambda l, m: (m, 0)),
            scratch_shapes=scratch_shapes,
        ),
        compiler_params=pltpu.CompilerParams(
            # Both axes must stay sequential: layers depend on each other and
            # all row strips of a layer feed the shared VMEM scratches.
            dimension_semantics=("arbitrary", "arbitrary"),
            vmem_limit_bytes=int(budget),
        ),
    )(adj_bf, x_pad, w_stack, b_stack, d_is)

    return out_pad[:, :out_channels]


def init_gcn_params(key, in_channels, hidden_channels, out_channels, num_layers):
    """Each layer: (W [Fin, Fout] pre-transposed, b [Fout])."""
    dims = [in_channels] + [hidden_channels] * (num_layers - 1) + [out_channels]
    params = []
    for layer in range(num_layers):
        f_in, f_out = dims[layer], dims[layer + 1]
        key, k1, k2 = jax.random.split(key, 3)
        scale = 1.0 / jnp.sqrt(jnp.float32(f_in))
        w = jax.random.uniform(k1, (f_in, f_out), jnp.float32, -scale, scale)
        b = jax.random.uniform(k2, (f_out,), jnp.float32, -0.1, 0.1)
        params.append((w, b))
    return params


if __name__ == "__main__":
    N = 256
    in_channels = 16
    hidden_channels = 32
    out_channels = 8
    num_layers = 3
    dropout = 0.5   # identity in eval mode

    key = jax.random.PRNGKey(0)
    kx, kadj, kparams = jax.random.split(key, 3)

    x = jax.random.normal(kx, (N, in_channels), jnp.float32)
    adj = (jax.random.uniform(kadj, (N, N)) < 0.05).astype(jnp.float32)
    adj = jnp.maximum(adj, adj.T) * (1.0 - jnp.eye(N, dtype=jnp.float32))

    params = init_gcn_params(kparams, in_channels, hidden_channels,
                             out_channels, num_layers)

    out = gcn_forward(x, adj, params, row_tile=128)  # grid = (3 layers, 2 strips)
    out = jax.block_until_ready(out)

    # Pure-JAX reference mirroring the kernel numerics (bf16 MXU inputs,
    # f32 accumulation, symmetric normalization with self loops).
    deg = jnp.sum(adj, axis=1, keepdims=True) + 1.0
    d_is = jax.lax.rsqrt(deg)
    adj_bf = adj.astype(jnp.bfloat16)
    h = x
    for li, (w, b) in enumerate(params):
        z = jnp.dot(h.astype(jnp.bfloat16), w.astype(jnp.bfloat16),
                    preferred_element_type=jnp.float32)
        u = (d_is * z).astype(jnp.bfloat16)
        agg = jnp.dot(adj_bf, u, preferred_element_type=jnp.float32)
        h = d_is * (agg + u.astype(jnp.float32)) + b.reshape(1, -1)
        if li != num_layers - 1:
            h = jnp.maximum(h, 0.0)
    ref = h

    assert out.shape == (N, out_channels)
    assert jnp.allclose(out, ref, atol=2e-2, rtol=2e-2), (
        float(jnp.max(jnp.abs(out - ref))))

    print("KERNEL_OK")
</pallas_src>

<mosaic_0001>
module attributes {stable_mosaic.version = 11 : i64} {
  func.func @_gcn_fused_kernel(%arg0: i32, %arg1: i32, %arg2: memref<256x256xbf16, #tpu.memory_space<any>>, %arg3: memref<256x128xbf16, #tpu.memory_space<any>>, %arg4: memref<1x128x128xbf16, #tpu.memory_space<vmem>>, %arg5: memref<1x1x128xf32, #tpu.memory_space<vmem>>, %arg6: memref<256x1xf32, #tpu.memory_space<vmem>>, %arg7: memref<128x128xf32, #tpu.memory_space<vmem>>, %arg8: memref<256x128xbf16, #tpu.memory_space<vmem>>, %arg9: memref<256x128xbf16, #tpu.memory_space<vmem>>, %arg10: memref<256x256xbf16, #tpu.memory_space<vmem>>, %arg11: memref<2x!tpu.dma_semaphore, #tpu.memory_space<semaphore_mem>>) attributes {dimension_semantics = [#tpu.dimension_semantics<arbitrary>, #tpu.dimension_semantics<arbitrary>], iteration_bounds = array<i64: 3, 2>, scalar_prefetch = 0 : i64, scratch_operands = 4 : i64, tpu.core_type = #tpu.core_type<tc>, window_params = [{}, {}, {transform_indices = @transform_2, window_bounds = array<i64: 1, 128, 128>}, {transform_indices = @transform_3, window_bounds = array<i64: 1, 1, 128>}, {pipeline_mode = #tpu.pipeline_mode<synchronous>, transform_indices = @transform_4, window_bounds = array<i64: 256, 1>}, {transform_indices = @transform_5, window_bounds = array<i64: 128, 128>}]} {
    %c0_i32 = arith.constant 0 : i32
    %0 = arith.cmpi eq, %arg0, %c0_i32 : i32
    %c0_i32_0 = arith.constant 0 : i32
    %1 = arith.cmpi eq, %arg1, %c0_i32_0 : i32
    %2 = arith.andi %0, %1 : i1
    %3 = arith.extui %2 : i1 to i32
    %c0_i32_1 = arith.constant 0 : i32
    %4 = arith.cmpi ne, %3, %c0_i32_1 : i32
    scf.if %4 {
      %c1_i32 = arith.constant 1 : i32
      %34 = tpu.memref_slice %arg11[%c1_i32] : memref<2x!tpu.dma_semaphore, #tpu.memory_space<semaphore_mem>> -> memref<1x!tpu.dma_semaphore, #tpu.memory_space<semaphore_mem>>
      %35 = tpu.memref_squeeze %34 : memref<1x!tpu.dma_semaphore, #tpu.memory_space<semaphore_mem>> -> memref<!tpu.dma_semaphore, #tpu.memory_space<semaphore_mem>>
      tpu.enqueue_dma source(%arg2 : memref<256x256xbf16, #tpu.memory_space<any>>) target(%arg10 : memref<256x256xbf16, #tpu.memory_space<vmem>>) target_semaphore(%35 : memref<!tpu.dma_semaphore, #tpu.memory_space<semaphore_mem>>)
      %c0_i32_15 = arith.constant 0 : i32
      %36 = tpu.memref_slice %arg11[%c0_i32_15] : memref<2x!tpu.dma_semaphore, #tpu.memory_space<semaphore_mem>> -> memref<1x!tpu.dma_semaphore, #tpu.memory_space<semaphore_mem>>
      %37 = tpu.memref_squeeze %36 : memref<1x!tpu.dma_semaphore, #tpu.memory_space<semaphore_mem>> -> memref<!tpu.dma_semaphore, #tpu.memory_space<semaphore_mem>>
      tpu.enqueue_dma source(%arg3 : memref<256x128xbf16, #tpu.memory_space<any>>) target(%arg8 : memref<256x128xbf16, #tpu.memory_space<vmem>>) target_semaphore(%37 : memref<!tpu.dma_semaphore, #tpu.memory_space<semaphore_mem>>)
      %c0_i32_16 = arith.constant 0 : i32
      %38 = tpu.memref_slice %arg11[%c0_i32_16] : memref<2x!tpu.dma_semaphore, #tpu.memory_space<semaphore_mem>> -> memref<1x!tpu.dma_semaphore, #tpu.memory_space<semaphore_mem>>
      %39 = tpu.memref_squeeze %38 : memref<1x!tpu.dma_semaphore, #tpu.memory_space<semaphore_mem>> -> memref<!tpu.dma_semaphore, #tpu.memory_space<semaphore_mem>>
      tpu.wait_dma2 semaphore(%39 : memref<!tpu.dma_semaphore, #tpu.memory_space<semaphore_mem>>) src(%arg3 : memref<256x128xbf16, #tpu.memory_space<any>>) dst(%arg8 : memref<256x128xbf16, #tpu.memory_space<vmem>>)
    } else {
    }
    %c0_i32_2 = arith.constant 0 : i32
    %5 = arith.cmpi eq, %arg1, %c0_i32_2 : i32
    %6 = arith.extui %5 : i1 to i32
    %c0_i32_3 = arith.constant 0 : i32
    %7 = arith.cmpi ne, %6, %c0_i32_3 : i32
    scf.if %7 {
      %c0_15 = arith.constant 0 : index
      %c0_16 = arith.constant 0 : index
      %c0_17 = arith.constant 0 : index
      %34 = vector.load %arg4[%c0_15, %c0_16, %c0_17] : memref<1x128x128xbf16, #tpu.memory_space<vmem>>, vector<1x128x128xbf16>
      %35 = vector.shape_cast %34 : vector<1x128x128xbf16> to vector<128x128xbf16>
      %c0_i32_18 = arith.constant 0 : i32
      %c128_i32_19 = arith.constant 128 : i32
      %36 = arith.muli %c0_i32_18, %c128_i32_19 : i32
      %37 = tpu.assume_multiple %36, 128 : i32
      %38 = arith.index_cast %37 : i32 to index
      %c0_20 = arith.constant 0 : index
      %39 = vector.load %arg8[%38, %c0_20] : memref<256x128xbf16, #tpu.memory_space<vmem>>, vector<128x128xbf16>
      %cst_21 = arith.constant dense<0.000000e+00> : vector<128x128xf32>
      %40 = tpu.matmul %39, %35, %cst_21 {dimension_numbers = #tpu.dot_dimension_numbers<[1], [0], [0], [1], [0, 0, 1, 1], [], []>} : vector<128x128xbf16>, vector<128x128xbf16>, vector<128x128xf32> -> vector<128x128xf32>
      %41 = arith.index_cast %37 : i32 to index
      %c0_22 = arith.constant 0 : index
      %42 = vector.load %arg6[%41, %c0_22] : memref<256x1xf32, #tpu.memory_space<vmem>>, vector<128x1xf32>
      %43 = vector.broadcast %42 : vector<128x1xf32> to vector<128x128xf32>
      %44 = arith.mulf %43, %40 : vector<128x128xf32>
      %45 = arith.truncf %44 : vector<128x128xf32> to vector<128x128xbf16>
      %46 = arith.index_cast %37 : i32 to index
      %c0_23 = arith.constant 0 : index
      %47 = vector.load %arg9[%46, %c0_23] : memref<256x128xbf16, #tpu.memory_space<vmem>>, vector<128x128xbf16>
      tpu.vector_store %arg9[%46, %c0_23], %45 {strides = array<i32>} : memref<256x128xbf16, #tpu.memory_space<vmem>>, vector<128x128xbf16>,
      %c1_i32 = arith.constant 1 : i32
      %c128_i32_24 = arith.constant 128 : i32
      %48 = arith.muli %c1_i32, %c128_i32_24 : i32
      %49 = tpu.assume_multiple %48, 128 : i32
      %50 = arith.index_cast %49 : i32 to index
      %c0_25 = arith.constant 0 : index
      %51 = vector.load %arg8[%50, %c0_25] : memref<256x128xbf16, #tpu.memory_space<vmem>>, vector<128x128xbf16>
      %cst_26 = arith.constant dense<0.000000e+00> : vector<128x128xf32>
      %52 = tpu.matmul %51, %35, %cst_26 {dimension_numbers = #tpu.dot_dimension_numbers<[1], [0], [0], [1], [0, 0, 1, 1], [], []>} : vector<128x128xbf16>, vector<128x128xbf16>, vector<128x128xf32> -> vector<128x128xf32>
      %53 = arith.index_cast %49 : i32 to index
      %c0_27 = arith.constant 0 : index
      %54 = vector.load %arg6[%53, %c0_27] : memref<256x1xf32, #tpu.memory_space<vmem>>, vector<128x1xf32>
      %55 = vector.broadcast %54 : vector<128x1xf32> to vector<128x128xf32>
      %56 = arith.mulf %55, %52 : vector<128x128xf32>
      %57 = arith.truncf %56 : vector<128x128xf32> to vector<128x128xbf16>
      %58 = arith.index_cast %49 : i32 to index
      %c0_28 = arith.constant 0 : index
      %59 = vector.load %arg9[%58, %c0_28] : memref<256x128xbf16, #tpu.memory_space<vmem>>, vector<128x128xbf16>
      tpu.vector_store %arg9[%58, %c0_28], %57 {strides = array<i32>} : memref<256x128xbf16, #tpu.memory_space<vmem>>, vector<128x128xbf16>,
      %c2_i32_29 = arith.constant 2 : i32
    } else {
    }
    %8 = arith.extui %2 : i1 to i32
    %c0_i32_4 = arith.constant 0 : i32
    %9 = arith.cmpi ne, %8, %c0_i32_4 : i32
    scf.if %9 {
      %c1_i32 = arith.constant 1 : i32
      %34 = tpu.memref_slice %arg11[%c1_i32] : memref<2x!tpu.dma_semaphore, #tpu.memory_space<semaphore_mem>> -> memref<1x!tpu.dma_semaphore, #tpu.memory_space<semaphore_mem>>
      %35 = tpu.memref_squeeze %34 : memref<1x!tpu.dma_semaphore, #tpu.memory_space<semaphore_mem>> -> memref<!tpu.dma_semaphore, #tpu.memory_space<semaphore_mem>>
      tpu.wait_dma2 semaphore(%35 : memref<!tpu.dma_semaphore, #tpu.memory_space<semaphore_mem>>) src(%arg2 : memref<256x256xbf16, #tpu.memory_space<any>>) dst(%arg10 : memref<256x256xbf16, #tpu.memory_space<vmem>>)
    } else {
    }
    %c128_i32 = arith.constant 128 : i32
    %10 = arith.muli %arg1, %c128_i32 : i32
    %11 = tpu.assume_multiple %10, 128 : i32
    %12 = arith.index_cast %11 : i32 to index
    %c0 = arith.constant 0 : index
    %13 = vector.load %arg10[%12, %c0] : memref<256x256xbf16, #tpu.memory_space<vmem>>, vector<128x256xbf16>
    %c0_5 = arith.constant 0 : index
    %c0_6 = arith.constant 0 : index
    %14 = vector.load %arg9[%c0_5, %c0_6] : memref<256x128xbf16, #tpu.memory_space<vmem>>, vector<256x128xbf16>
    %cst = arith.constant dense<0.000000e+00> : vector<128x128xf32>
    %15 = tpu.matmul %13, %14, %cst {dimension_numbers = #tpu.dot_dimension_numbers<[1], [0], [0], [1], [0, 0, 1, 1], [], []>} : vector<128x256xbf16>, vector<256x128xbf16>, vector<128x128xf32> -> vector<128x128xf32>
    %16 = arith.index_cast %11 : i32 to index
    %c0_7 = arith.constant 0 : index
    %17 = vector.load %arg6[%16, %c0_7] : memref<256x1xf32, #tpu.memory_space<vmem>>, vector<128x1xf32>
    %18 = arith.index_cast %11 : i32 to index
    %c0_8 = arith.constant 0 : index
    %19 = vector.load %arg9[%18, %c0_8] : memref<256x128xbf16, #tpu.memory_space<vmem>>, vector<128x128xbf16>
    %20 = arith.extf %19 : vector<128x128xbf16> to vector<128x128xf32>
    %21 = arith.addf %15, %20 : vector<128x128xf32>
    %22 = vector.broadcast %17 : vector<128x1xf32> to vector<128x128xf32>
    %23 = arith.mulf %22, %21 : vector<128x128xf32>
    %c0_9 = arith.constant 0 : index
    %c0_10 = arith.constant 0 : index
    %c0_11 = arith.constant 0 : index
    %24 = vector.load %arg5[%c0_9, %c0_10, %c0_11] : memref<1x1x128xf32, #tpu.memory_space<vmem>>, vector<1x1x128xf32>
    %25 = vector.shape_cast %24 : vector<1x1x128xf32> to vector<1x128xf32>
    %26 = vector.broadcast %25 : vector<1x128xf32> to vector<128x128xf32>
    %27 = arith.addf %23, %26 : vector<128x128xf32>
    %c2_i32 = arith.constant 2 : i32
    %28 = arith.cmpi slt, %arg0, %c2_i32 : i32
    %29 = arith.extui %28 : i1 to i32
    %c0_i32_12 = arith.constant 0 : i32
    %30 = arith.cmpi ne, %29, %c0_i32_12 : i32
    scf.if %30 {
      %cst_15 = arith.constant 0.000000e+00 : f32
      %34 = vector.broadcast %cst_15 : f32 to vector<128x128xf32>
      %35 = arith.maximumf %27, %34 : vector<128x128xf32>
      %36 = arith.truncf %35 : vector<128x128xf32> to vector<128x128xbf16>
      %37 = arith.index_cast %11 : i32 to index
      %c0_16 = arith.constant 0 : index
      %38 = vector.load %arg8[%37, %c0_16] : memref<256x128xbf16, #tpu.memory_space<vmem>>, vector<128x128xbf16>
      tpu.vector_store %arg8[%37, %c0_16], %36 {strides = array<i32>} : memref<256x128xbf16, #tpu.memory_space<vmem>>, vector<128x128xbf16>,
    } else {
    }
    %c2_i32_13 = arith.constant 2 : i32
    %31 = arith.cmpi eq, %arg0, %c2_i32_13 : i32
    %32 = arith.extui %31 : i1 to i32
    %c0_i32_14 = arith.constant 0 : i32
    %33 = arith.cmpi ne, %32, %c0_i32_14 : i32
    scf.if %33 {
      %c0_15 = arith.constant 0 : index
      %c0_16 = arith.constant 0 : index
      %34 = vector.load %arg7[%c0_15, %c0_16] : memref<128x128xf32, #tpu.memory_space<vmem>>, vector<128x128xf32>
      tpu.vector_store %arg7[%c0_15, %c0_16], %27 {strides = array<i32>} : memref<128x128xf32, #tpu.memory_space<vmem>>, vector<128x128xf32>,
    } else {
    }
    return
  }
  func.func @transform_2(%arg0: i32, %arg1: i32) -> (i32, i32, i32) {
    %c0_i32 = arith.constant 0 : i32
    %c0_i32_0 = arith.constant 0 : i32
    %c0_i32_1 = arith.constant 0 : i32
    return %arg0, %c0_i32, %c0_i32_0 : i32, i32, i32
  }
  func.func @transform_3(%arg0: i32, %arg1: i32) -> (i32, i32, i32) {
    %c0_i32 = arith.constant 0 : i32
    %c0_i32_0 = arith.constant 0 : i32
    %c0_i32_1 = arith.constant 0 : i32
    return %arg0, %c0_i32, %c0_i32_0 : i32, i32, i32
  }
  func.func @transform_4(%arg0: i32, %arg1: i32) -> (i32, i32) {
    %c0_i32 = arith.constant 0 : i32
    %c0_i32_0 = arith.constant 0 : i32
    %c0_i32_1 = arith.constant 0 : i32
    return %c0_i32, %c0_i32_0 : i32, i32
  }
  func.func @transform_5(%arg0: i32, %arg1: i32) -> (i32, i32) {
    %c0_i32 = arith.constant 0 : i32
    %c0_i32_0 = arith.constant 0 : i32
    return %arg1, %c0_i32 : i32, i32
  }
}

</mosaic_0001>

<bundles_post_ra>
// kernel: tpu_custom_call.1
= control target key start
LH: loop header
LB: loop body
LE: loop exit
PB: predicated region body
PF: predicated region fallthrough
CT: control target
= control target key end

     0   :  { %10 = vsyncpa [#allocation7], 0  ;;  %s3099_s0 = inlined_call_operand.vmem [shape: bf16[256,256], index: 0, kind: input, shape index: {}]   ;;  %s3100_s1 = inlined_call_operand.hbm [shape: bf16[256,128], index: 1, kind: input, shape index: {}]   ;;  %s3101_s2 = inlined_call_operand.hbm [shape: bf16[3,128,128], index: 2, kind: input, shape index: {}]   ;;  %s3102_s3 = inlined_call_operand.vmem [shape: f32[3,1,128], index: 3, kind: input, shape index: {}]   ;;  %s3103_s4 = inlined_call_operand.vmem [shape: f32[256,1], index: 4, kind: input, shape index: {}]   ;;  %s3104_s5 = inlined_call_operand.hbm [shape: f32[256,128], index: 5, kind: output, shape index: {}]  }
   0x1   :  { %12 = vsyncpa [#allocation7 + $0x1], 0 }
   0x2   :  { %13 = vsyncpa [#allocation8], 0 }
   0x3   :  { %15 = vsyncpa [#allocation8 + $0x1], 0  ;;  %s2493_s18 = smov 0   ;;  %s2495_s19 = smov 0  }
   0x4   :  { %s2497_s20 = smov 0   ;;  %s2499_s21 = smov 0  }
   0x5   :  { %s2501_s22 = smov 0   ;;  %s2503_s23 = smov 0  }
   0x6   :  { %s2505_s24 = smov 0   ;;  %s2507_s25 = smov 0  }
   0x7   :  { %s2509_s26 = smov 0   ;;  %s2511_s27 = smov 0  }
   0x8   :  { %s2513_s28 = smov 0  }
   0x9 LB: > { %3111 = sst [smem:[#allocation19_spill]] %s2434_s23  ;;  %s1618_s29 = sadd.s32 4294967295, %s2454_s28   ;;  %s2454_s28 = sphi %s2513_s28, %s21_s28   ;;  %s2450_s27 = sphi %s2511_s27, %s3128_s27   ;;  %s2446_s26 = sphi %s2509_s26, %s3127_s26   ;;  %s2442_s25 = sphi %s2507_s25, %s3126_s25   ;;  %s2438_s24 = sphi %s2505_s24, %s3125_s24   ;;  %s2434_s23 = sphi %s2503_s23, %s3124_s23   ;;  %s2430_s22 = sphi %s2501_s22, %s3133_s22   ;;  %s2426_s21 = sphi %s2499_s21, %s3132_s21   ;;  %s2422_s20 = sphi %s2497_s20, %s3131_s20   ;;  %s2418_s19 = sphi %s2495_s19, %s3130_s19   ;;  %s2414_s18 = sphi %s2493_s18, %s3129_s18  }
   0xa   : > { %3112 = sst [smem:[#allocation20_spill]] %s2446_s26  ;;  %s1619_s30 = sadd.s32 4294967294, %s2454_s28  }
   0xb   : > { %3113 = sst [smem:[#allocation21_spill]] %s2450_s27  ;;  %s30_s6 = sadd.s32 1, %s2446_s26 }
   0xc   : > { %s33_s7 = sadd.s32 1, %s2450_s27  ;;  %p31_p0 = scmp.ge.s32.totalorder %s30_s6, 2 }
   0xd   : > { %s40_s8 = sadd.s32 1, %s2434_s23  ;;  %p47_p1 = scmp.ne.s32.totalorder %s2434_s23, %s2430_s22 }
   0xe   : > { %p48_p2 = scmp.eq.s32.totalorder %s2454_s28, 0  ;;  %s3135_s6 = smov (%p31_p0, %s30_s6), 0 }
   0xf   : > { %3114 = sst [smem:[#allocation22_spill]] %s3135_s6  ;;  %s3137_s7 = smov (!%p31_p0, %s33_s7), %s2450_s27 }
  0x10   : > { %p2557_p3 = por %p48_p2, %p47_p1  ;;  %p53_p4 = scmp.ne.s32.totalorder %s2430_s22, %s2426_s21 }
  0x11   : > { %p35_p5 = scmp.ge.s32.totalorder %s3137_s7, 3  ;;  %p54_p6 = scmp.eq.s32.totalorder %s1618_s29, 0 }
  0x12   : > { %s110_s10 = ssub.s32 %s2446_s26, %s3135_s6  ;;  %s113_s11 = sadd.s32 1, %s2422_s20 }
  0x13   : > { %s3139_s7 = smov (%p35_p5, %s3137_s7), 0  ;;  %p2567_p7 = por %p54_p6, %p53_p4 }
  0x14   : > { %3116 = sst [smem:[#allocation23_spill]] %s3139_s7  ;;  %p111_p8 = scmp.eq.s32.totalorder %s110_s10, 0 }
  0x15   : > { %s37_s13 = ssub.s32 %s2450_s27, %s3139_s7  ;;  %p123_p9 = scmp.ne.s32.totalorder %s2422_s20, %s2418_s19 }
  0x16   : > { %p38_p10 = scmp.eq.s32.totalorder %s37_s13, 0  ;;  %p124_p11 = scmp.eq.s32.totalorder %s1618_s29, 5 }
  0x17   : > { %s2576_s14 = scalar_select %p111_p8, %s2422_s20, %s113_s11  }
  0x18   : > { %s2579_s15 = scalar_select %p38_p10, %s2434_s23, %s40_s8  }
  0x19   : > { %p2581_p12 = por %p124_p11, %p123_p9  ;;  %p129_p13 = scmp.ne.s32.totalorder %s2418_s19, %s2414_s18 }
  0x1a   : > { %3118 = sst [smem:[#allocation24_spill]] %s2579_s15  ;;  %p130_p0 = scmp.eq.s32.totalorder %s1619_s30, 5 }
  0x1b   : > { %p2168_p1 = scmp.lt.s32.totalorder %s2454_s28, 6  ;;  %s153_s17 = sand.u32 1, %s2434_s23  }
  0x1c   : > { %p2589_p2 = por %p130_p0, %p129_p13  ;;  %s1622_s29 = sshll.u32 %s153_s17, 6 }
  0x1d   : > { %s1883_s10 = sshll.u32 %s2450_s27, 6  ;;  %s157_s6 = scalar_lea.vmem [#allocation6], %s1622_s29 }
  0x1e   : > { %s162_s8 = scalar_lea.hbm %s3101_s2, %s1883_s10  ;;  %s165_s26 = sshll.u32 %s157_s6, 4  ;;  %s166_s26 = int_to_ptr.vmem [resolvable:$true] %s165_s26 }
  0x1f   : > { %s163_s7 = sshll.u32 %s162_s8, 4  ;;  %p2161_p4 = pnand %p2168_p1, %p2557_p3  ;;  %s164_s7 = int_to_ptr.hbm [resolvable:$true] %s163_s7 }
  0x20   : > { %p1625_p5 = scmp.ge.s32.totalorder %s2454_s28, 1  ;;  %p179_p6 = scmp.lt.s32.totalorder %s2454_s28, 7 }
  0x21   : > { %s154_s30 = scalar_lea.sflag [#allocation7], %s153_s17  ;;  %s2456_s15 = smov 64  }
  0x22   : > { %s2457_s23 = smov 4   ;;  %p180_p8 = pnand %p1625_p5, %p179_p6 }
  0x23   : > { %2163 = dma.hbm_to_vmem [thread:$0]  (!%p2161_p4), %s164_s7, 1024, %s166_s26, %s154_s30, %s2456_s15, %s2456_s15, %s2457_s23  }
  0x24   : > { %183 = sbr.rel (%p180_p8) target bundleno = 610 (0x262), region = 32  ;;  %s185_s27 = sand.u32 (!%p180_p8), 1, %s2430_s22  }
  0x25   : > { %s1626_s11 = sshll.u32 (!%p180_p8), %s185_s27, 6  ;;  %s186_s10 = scalar_lea.sflag (!%p180_p8), [#allocation7], %s185_s27 }
  0x26   : > { %s2602_s13 = scalar_lea.vmem (!%p180_p8), [#allocation6], %s1626_s11 }
  0x29   : > { %2399 = dma.done.wait (%p2567_p7), %s186_s10, 1024  }
  0x2a   : > { %2401 = vsyncadd (%p2567_p7), %s186_s10, 4294966272  ;;  %s3110_s23 = sand.u32 1, %s2418_s19   ;;  %p216_p3 = scmp.lt.s32.totalorder %s2442_s25, 2 }
  0x2b   : > { %s1627_s26 = sshll.u32 %s3110_s23, 7  ;;  %p220_p9 = scmp.eq.s32.totalorder %s2442_s25, 0 }
  0x2c   : > { %p221_p10 = scmp.eq.s32.totalorder %s2438_s24, 0  ;;  %s2625_s15 = scalar_lea.vmem [#allocation9], %s1627_s26 }
  0x2d   : > { %s2615_s27 = scalar_select %p216_p3, %s2442_s25, 2 }
  0x2e   : > { %p2617_p11 = pnand %p221_p10, %p220_p9 }
  0x2f   : > { %s218_s12 = scalar_lea.vmem %s3102_s3, %s2615_s27 }
  0x30   : > { %225 = sbr.rel (%p2617_p11) target bundleno = 91 (0x5b), region = 40 }
  0x35   : > { %v237_v0 = vld [vmem:[%s3099_s0] sm:$0xff]  ;;  %v239_v1 = vld [vmem:[%s3099_s0 + $0x8] sm:$0xff]  ;;  %v241_v2 = vld [vmem:[%s3099_s0 + $0x10] sm:$0xff] }
  0x36   : > { %238 = vst [vmem:[#allocation4] sm:$0xff] %v237_v0  ;;  %v243_v3 = vld [vmem:[%s3099_s0 + $0x18] sm:$0xff]  ;;  %v245_v4 = vld [vmem:[%s3099_s0 + $0x20] sm:$0xff]  ;;  %v247_v5 = vld [vmem:[%s3099_s0 + $0x28] sm:$0xff] }
  0x37   : > { %240 = vst [vmem:[#allocation4 + $0x8] sm:$0xff] %v239_v1  ;;  %v249_v6 = vld [vmem:[%s3099_s0 + $0x30] sm:$0xff]  ;;  %v251_v7 = vld [vmem:[%s3099_s0 + $0x38] sm:$0xff]  ;;  %v253_v8 = vld [vmem:[%s3099_s0 + $0x40] sm:$0xff] }
  0x38   : > { %242 = vst [vmem:[#allocation4 + $0x10] sm:$0xff] %v241_v2  ;;  %v255_v9 = vld [vmem:[%s3099_s0 + $0x48] sm:$0xff]  ;;  %v257_v10 = vld [vmem:[%s3099_s0 + $0x50] sm:$0xff]  ;;  %v259_v11 = vld [vmem:[%s3099_s0 + $0x58] sm:$0xff] }
  0x39   : > { %244 = vst [vmem:[#allocation4 + $0x18] sm:$0xff] %v243_v3  ;;  %v261_v12 = vld [vmem:[%s3099_s0 + $0x60] sm:$0xff]  ;;  %v263_v13 = vld [vmem:[%s3099_s0 + $0x68] sm:$0xff]  ;;  %v265_v14 = vld [vmem:[%s3099_s0 + $0x70] sm:$0xff] }
  0x3a   : > { %246 = vst [vmem:[#allocation4 + $0x20] sm:$0xff] %v245_v4  ;;  %v267_v15 = vld [vmem:[%s3099_s0 + $0x78] sm:$0xff]  ;;  %v269_v16 = vld [vmem:[%s3099_s0 + $0x80] sm:$0xff]  ;;  %v271_v17 = vld [vmem:[%s3099_s0 + $0x88] sm:$0xff] }
  0x3b   : > { %248 = vst [vmem:[#allocation4 + $0x28] sm:$0xff] %v247_v5  ;;  %v273_v18 = vld [vmem:[%s3099_s0 + $0x90] sm:$0xff]  ;;  %v275_v19 = vld [vmem:[%s3099_s0 + $0x98] sm:$0xff]  ;;  %v277_v20 = vld [vmem:[%s3099_s0 + $0xa0] sm:$0xff] }
  0x3c   : > { %250 = vst [vmem:[#allocation4 + $0x30] sm:$0xff] %v249_v6  ;;  %v279_v21 = vld [vmem:[%s3099_s0 + $0xa8] sm:$0xff]  ;;  %v281_v22 = vld [vmem:[%s3099_s0 + $0xb0] sm:$0xff]  ;;  %v283_v23 = vld [vmem:[%s3099_s0 + $0xb8] sm:$0xff] }
  0x3d   : > { %252 = vst [vmem:[#allocation4 + $0x38] sm:$0xff] %v251_v7  ;;  %v285_v24 = vld [vmem:[%s3099_s0 + $0xc0] sm:$0xff]  ;;  %v287_v25 = vld [vmem:[%s3099_s0 + $0xc8] sm:$0xff]  ;;  %v289_v26 = vld [vmem:[%s3099_s0 + $0xd0] sm:$0xff] }
  0x3e   : > { %254 = vst [vmem:[#allocation4 + $0x40] sm:$0xff] %v253_v8  ;;  %v291_v27 = vld [vmem:[%s3099_s0 + $0xd8] sm:$0xff]  ;;  %v293_v28 = vld [vmem:[%s3099_s0 + $0xe0] sm:$0xff]  ;;  %v295_v29 = vld [vmem:[%s3099_s0 + $0xe8] sm:$0xff] }
  0x3f   : > { %256 = vst [vmem:[#allocation4 + $0x48] sm:$0xff] %v255_v9  ;;  %v297_v30 = vld [vmem:[%s3099_s0 + $0xf0] sm:$0xff]  ;;  %v299_v31 = vld [vmem:[%s3099_s0 + $0xf8] sm:$0xff] }
  0x40   : > { %258 = vst [vmem:[#allocation4 + $0x50] sm:$0xff] %v257_v10 }
  0x41   : > { %260 = vst [vmem:[#allocation4 + $0x58] sm:$0xff] %v259_v11 }
  0x42   : > { %262 = vst [vmem:[#allocation4 + $0x60] sm:$0xff] %v261_v12 }
  0x43   : > { %264 = vst [vmem:[#allocation4 + $0x68] sm:$0xff] %v263_v13 }
  0x44   : > { %266 = vst [vmem:[#allocation4 + $0x70] sm:$0xff] %v265_v14 }
  0x45   : > { %268 = vst [vmem:[#allocation4 + $0x78] sm:$0xff] %v267_v15 }
  0x46   : > { %270 = vst [vmem:[#allocation4 + $0x80] sm:$0xff] %v269_v16 }
  0x47   : > { %272 = vst [vmem:[#allocation4 + $0x88] sm:$0xff] %v271_v17 }
  0x48   : > { %274 = vst [vmem:[#allocation4 + $0x90] sm:$0xff] %v273_v18 }
  0x49   : > { %276 = vst [vmem:[#allocation4 + $0x98] sm:$0xff] %v275_v19 }
  0x4a   : > { %278 = vst [vmem:[#allocation4 + $0xa0] sm:$0xff] %v277_v20 }
  0x4b   : > { %280 = vst [vmem:[#allocation4 + $0xa8] sm:$0xff] %v279_v21 }
  0x4c   : > { %282 = vst [vmem:[#allocation4 + $0xb0] sm:$0xff] %v281_v22 }
  0x4d   : > { %284 = vst [vmem:[#allocation4 + $0xb8] sm:$0xff] %v283_v23 }
  0x4e   : > { %286 = vst [vmem:[#allocation4 + $0xc0] sm:$0xff] %v285_v24 }
  0x4f   : > { %288 = vst [vmem:[#allocation4 + $0xc8] sm:$0xff] %v287_v25 }
  0x50   : > { %290 = vst [vmem:[#allocation4 + $0xd0] sm:$0xff] %v289_v26 }
  0x51   : > { %292 = vst [vmem:[#allocation4 + $0xd8] sm:$0xff] %v291_v27 }
  0x52   : > { %294 = vst [vmem:[#allocation4 + $0xe0] sm:$0xff] %v293_v28 }
  0x53   : > { %296 = vst [vmem:[#allocation4 + $0xe8] sm:$0xff] %v295_v29 }
  0x54   : > { %298 = vst [vmem:[#allocation4 + $0xf0] sm:$0xff] %v297_v30 }
  0x55   : > { %300 = vst [vmem:[#allocation4 + $0xf8] sm:$0xff] %v299_v31 }
  0x56   : > { %306 = vsyncadd [#allocation5 + $0x1], 4096  ;;  %s314_s7 = sshll.u32 %s3100_s1, 4  ;;  %s2458_s9 = smov [#allocation2]   ;;  %s315_s7 = int_to_ptr.hbm [resolvable:$true] %s314_s7 }
  0x57   : > { %s316_s23 = sshll.u32 %s2458_s9, 4  ;;  %s317_s23 = int_to_ptr.vmem [resolvable:$true] %s316_s23 }
  0x58   : > { %319 = dma.hbm_to_vmem [thread:$0]  %s315_s7, 2048, %s317_s23, [#allocation5] }
  0x59   : > { %2402 = dma.done.wait [#allocation5], 2048 }
  0x5a   : > { %2403 = vsyncadd [#allocation5], 4294965248 }
  0x5b PF: > { %p1628_p7 = scmp.ne.s32.totalorder %s2438_s24, 0 }
  0x5d   : > { %326 = sbr.rel (%p1628_p7) target bundleno = 328 (0x148), region = 67 }
  0x62   : > { %v508_v32 = vld [vmem:[%s3103_s4 + $0x20] sm:$0xff]  ;;  %v506_v33 = vld [vmem:[%s3103_s4 + $0x10] sm:$0xff]  ;;  %v2459_v35 = vmov 0   ;;  %v1891_v36 = vld [vmem:[%s2602_s13 + $0x38] sm:$0xff] }
  0x63   : > { %v504_v34 = vld [vmem:[%s3103_s4] sm:$0xff]  ;;  %2267 = vset.pattern.permute.xlu2 %v2459_v35  ;;  %2266 = vset.pattern.permute.xlu1 %v2459_v35  ;;  %v1890_v37 = vld [vmem:[%s2602_s13 + $0x30] sm:$0xff]  ;;  %v509_v38 = vld [vmem:[%s3103_s4 + $0x28] sm:$0xff] }
  0x64   : > { %2265 = vset.pattern.permute.xlu0 %v2459_v35  ;;  %542 = vperm.xlu2 %2267, %v508_v32   ;;  %v507_v39 = vld [vmem:[%s3103_s4 + $0x18] sm:$0xff]  ;;  %v505_v40 = vld [vmem:[%s3103_s4 + $0x8] sm:$0xff]  ;;  %v1888_v42 = vld [vmem:[%s2602_s13 + $0x20] sm:$0xff] }
  0x65   : > { %532 = vperm.xlu1 %2266, %v506_v33   ;;  %522 = vperm.xlu0 %2265, %v504_v34   ;;  %v1889_v41 = vld [vmem:[%s2602_s13 + $0x28] sm:$0xff]  ;;  %v512_v43 = vld [vmem:[%s3103_s4 + $0x40] sm:$0xff]  ;;  %v511_v44 = vld [vmem:[%s3103_s4 + $0x38] sm:$0xff] }
  0x66   : > { %455 = vmatpush.bf16.msra.mxu0 %v1891_v36  ;;  %2122 = vmatpush.bf16.msra.mxu2 %v1891_v36  ;;  %v510_v45 = vld [vmem:[%s3103_s4 + $0x30] sm:$0xff]  ;;  %v1887_v46 = vld [vmem:[%s2602_s13 + $0x18] sm:$0xff]  ;;  %v513_v50 = vld [vmem:[%s3103_s4 + $0x48] sm:$0xff] }
  0x67   : > { %713 = vmatpush.bf16.msra.mxu1 %v1891_v36  ;;  %2130 = vmatpush.bf16.msra.mxu3 %v1891_v36  ;;  %v1886_v47 = vld [vmem:[%s2602_s13 + $0x10] sm:$0xff]  ;;  %v515_v48 = vld [vmem:[%s3103_s4 + $0x58] sm:$0xff]  ;;  %v1885_v51 = vld [vmem:[%s2602_s13 + $0x8] sm:$0xff] }
  0x68   : > { %v514_v49 = vld [vmem:[%s3103_s4 + $0x50] sm:$0xff]  ;;  %v1884_v52 = vld [vmem:[%s2602_s13] sm:$0xff]  ;;  %v517_v54 = vld [vmem:[%s3103_s4 + $0x68] sm:$0xff] }
  0x69   : > { %v518_v53 = vld [vmem:[%s3103_s4 + $0x70] sm:$0xff]  ;;  %v516_v55 = vld [vmem:[%s3103_s4 + $0x60] sm:$0xff]  ;;  %v1726_v60 = vld [vmem:[%s3103_s4 + $0x88] sm:$0xff] }
  0x6a   : > { %456 = vmatpush.bf16.msra.mxu0 %v1890_v37  ;;  %2123 = vmatpush.bf16.msra.mxu2 %v1890_v37  ;;  %v1892_v56 = vld [vmem:[#allocation2] sm:$0xff]  ;;  %v519_v62 = vld [vmem:[%s3103_s4 + $0x78] sm:$0xff]  ;;  %v1727_v1 = vld [vmem:[%s3103_s4 + $0x90] sm:$0xff] }
  0x6b   : > { %714 = vmatpush.bf16.msra.mxu1 %v1890_v37  ;;  %2131 = vmatpush.bf16.msra.mxu3 %v1890_v37  ;;  %v1896_v57 = vld [vmem:[#allocation2 + $0x20] sm:$0xff]  ;;  %v1728_v0 = vld [vmem:[%s3103_s4 + $0x98] sm:$0xff]  ;;  %v1893_v2 = vld [vmem:[#allocation2 + $0x8] sm:$0xff] }
  0x6c   : > { %547 = vperm.xlu2 %2267, %v509_v38   ;;  %v1900_v58 = vld [vmem:[#allocation2 + $0x40] sm:$0xff]  ;;  %v1897_v3 = vld [vmem:[#allocation2 + $0x28] sm:$0xff]  ;;  %v1732_v6 = vld [vmem:[%s3103_s4 + $0xb8] sm:$0xff] }
  0x6d   : > { %537 = vperm.xlu1 %2266, %v507_v39   ;;  %527 = vperm.xlu0 %2265, %v505_v40   ;;  %v1904_v59 = vld [vmem:[#allocation2 + $0x60] sm:$0xff]  ;;  %v1901_v4 = vld [vmem:[#allocation2 + $0x48] sm:$0xff]  ;;  %v1731_v7 = vld [vmem:[%s3103_s4 + $0xb0] sm:$0xff] }
  0x6e   : > { %457 = vmatpush.bf16.msra.mxu0 %v1889_v41  ;;  %2124 = vmatpush.bf16.msra.mxu2 %v1889_v41  ;;  %v1725_v61 = vld [vmem:[%s3103_s4 + $0x80] sm:$0xff]  ;;  %v1905_v5 = vld [vmem:[#allocation2 + $0x68] sm:$0xff]  ;;  %v1735_v9 = vld [vmem:[%s3103_s4 + $0xd0] sm:$0xff] }
  0x6f   : > { %715 = vmatpush.bf16.msra.mxu1 %v1889_v41  ;;  %2132 = vmatpush.bf16.msra.mxu3 %v1889_v41  ;;  %v1729_v63 = vld [vmem:[%s3103_s4 + $0xa0] sm:$0xff]  ;;  %v1730_v8 = vld [vmem:[%s3103_s4 + $0xa8] sm:$0xff]  ;;  %v1894_v12 = vld [vmem:[#allocation2 + $0x10] sm:$0xff] }
  0x70   : > { %v1734_v10 = vld [vmem:[%s3103_s4 + $0xc8] sm:$0xff]  ;;  %v1733_v11 = vld [vmem:[%s3103_s4 + $0xc0] sm:$0xff]  ;;  %v1898_v13 = vld [vmem:[#allocation2 + $0x30] sm:$0xff] }
  0x71   : > { %v1902_v14 = vld [vmem:[#allocation2 + $0x50] sm:$0xff]  ;;  %v1738_v16 = vld [vmem:[%s3103_s4 + $0xe8] sm:$0xff]  ;;  %v1737_v17 = vld [vmem:[%s3103_s4 + $0xe0] sm:$0xff] }
  0x72   : > { %458 = vmatpush.bf16.msra.mxu0 %v1888_v42  ;;  %2125 = vmatpush.bf16.msra.mxu2 %v1888_v42  ;;  %v1906_v15 = vld [vmem:[#allocation2 + $0x70] sm:$0xff]  ;;  %v1736_v18 = vld [vmem:[%s3103_s4 + $0xd8] sm:$0xff] }
  0x73   : > { %716 = vmatpush.bf16.msra.mxu1 %v1888_v42  ;;  %2133 = vmatpush.bf16.msra.mxu3 %v1888_v42  ;;  %v1740_v19 = vld [vmem:[%s3103_s4 + $0xf8] sm:$0xff]  ;;  %v1739_v20 = vld [vmem:[%s3103_s4 + $0xf0] sm:$0xff] }
  0x74   : > { %562 = vperm.xlu2 %2267, %v512_v43   ;;  %v1895_v21 = vld [vmem:[#allocation2 + $0x18] sm:$0xff] }
  0x75   : > { %557 = vperm.xlu1 %2266, %v511_v44   ;;  %552 = vperm.xlu0 %2265, %v510_v45   ;;  %v1899_v22 = vld [vmem:[#allocation2 + $0x38] sm:$0xff] }
  0x76   : > { %459 = vmatpush.bf16.msra.mxu0 %v1887_v46  ;;  %2126 = vmatpush.bf16.msra.mxu2 %v1887_v46  ;;  %v1903_v23 = vld [vmem:[#allocation2 + $0x58] sm:$0xff] }
  0x77   : > { %717 = vmatpush.bf16.msra.mxu1 %v1887_v46  ;;  %2134 = vmatpush.bf16.msra.mxu3 %v1887_v46  ;;  %v1907_v24 = vld [vmem:[#allocation2 + $0x78] sm:$0xff] }
  0x7a   : > { %460 = vmatpush.bf16.msra.mxu0 %v1886_v47  ;;  %2127 = vmatpush.bf16.msra.mxu2 %v1886_v47 }
  0x7b   : > { %718 = vmatpush.bf16.msra.mxu1 %v1886_v47  ;;  %2135 = vmatpush.bf16.msra.mxu3 %v1886_v47 }
  0x7c   : > { %577 = vperm.xlu2 %2267, %v515_v48  }
  0x7d   : > { %572 = vperm.xlu1 %2266, %v514_v49   ;;  %567 = vperm.xlu0 %2265, %v513_v50  }
  0x7e   : > { %461 = vmatpush.bf16.msra.mxu0 %v1885_v51  ;;  %2128 = vmatpush.bf16.msra.mxu2 %v1885_v51 }
  0x7f   : > { %719 = vmatpush.bf16.msra.mxu1 %v1885_v51  ;;  %2136 = vmatpush.bf16.msra.mxu3 %v1885_v51 }
  0x82   : > { %462 = vmatpush.bf16.msra.mxu0 %v1884_v52  ;;  %2129 = vmatpush.bf16.msra.mxu2 %v1884_v52 }
  0x83   : > { %720 = vmatpush.bf16.msra.mxu1 %v1884_v52  ;;  %2137 = vmatpush.bf16.msra.mxu3 %v1884_v52 }
  0x84   : > { %592 = vperm.xlu2 %2267, %v518_v53  }
  0x85   : > { %587 = vperm.xlu1 %2266, %v517_v54   ;;  %582 = vperm.xlu0 %2265, %v516_v55  }
  0x86   : > { %463 = vmatmul.bf16.vlgmr.msra.gmra.mxu0 %v1892_v56  ;;  %483 = vmatmul.bf16.vlgmr.msra.gmra.mxu2 %v1896_v57 }
  0x87   : > { %721 = vmatmul.bf16.vlgmr.msra.gmra.mxu1 %v1900_v58  ;;  %741 = vmatmul.bf16.vlgmr.msra.gmra.mxu3 %v1904_v59 }
  0x8c   : > { %786 = vperm.xlu2 %2267, %v1726_v60  }
  0x8d   : > { %781 = vperm.xlu1 %2266, %v1725_v61   ;;  %597 = vperm.xlu0 %2265, %v519_v62  }
  0x94   : > { %801 = vperm.xlu2 %2267, %v1729_v63  }
  0x95   : > { %796 = vperm.xlu1 %2266, %v1728_v0   ;;  %791 = vperm.xlu0 %2265, %v1727_v1  }
  0x96   : > { %468 = vmatmul.bf16.gmra.mxu0 %v1893_v2  ;;  %488 = vmatmul.bf16.gmra.mxu2 %v1897_v3 }
  0x97   : > { %726 = vmatmul.bf16.gmra.mxu1 %v1901_v4  ;;  %746 = vmatmul.bf16.gmra.mxu3 %v1905_v5 }
  0x9c   : > { %816 = vperm.xlu2 %2267, %v1732_v6  }
  0x9d   : > { %811 = vperm.xlu1 %2266, %v1731_v7   ;;  %806 = vperm.xlu0 %2265, %v1730_v8  }
  0xa4   : > { %831 = vperm.xlu2 %2267, %v1735_v9  }
  0xa5   : > { %826 = vperm.xlu1 %2266, %v1734_v10   ;;  %821 = vperm.xlu0 %2265, %v1733_v11  }
  0xa6   : > { %473 = vmatmul.bf16.gmra.mxu0 %v1894_v12  ;;  %493 = vmatmul.bf16.gmra.mxu2 %v1898_v13 }
  0xa7   : > { %731 = vmatmul.bf16.gmra.mxu1 %v1902_v14  ;;  %751 = vmatmul.bf16.gmra.mxu3 %v1906_v15 }
  0xac   : > { %846 = vperm.xlu2 %2267, %v1738_v16  }
  0xad   : > { %841 = vperm.xlu1 %2266, %v1737_v17   ;;  %836 = vperm.xlu0 %2265, %v1736_v18  }
  0xb5   : > { %856 = vperm.xlu1 %2266, %v1740_v19   ;;  %851 = vperm.xlu0 %2265, %v1739_v20  }
  0xb6   : > { %478 = vmatmul.bf16.gmra.mxu0 %v1895_v21  ;;  %498 = vmatmul.bf16.gmra.mxu2 %v1899_v22 }
  0xb7   : > { %736 = vmatmul.bf16.gmra.mxu1 %v1903_v23  ;;  %756 = vmatmul.bf16.gmra.mxu3 %v1907_v24 }
  0xbe   : > { %v2833_v25 = vpop.permute.xlu2 %542 }
  0xc6   : > { %v2835_v28 = vpop.permute.xlu2 %547 }
  0xce   : > { %v563_v31 = vpop.permute.xlu2 %562 }
  0xd6   : > { %v578_v36 = vpop.permute.xlu2 %577 }
  0xd7   : > { %v533_v26 = vpop.permute.xlu1 %532  ;;  %v523_v27 = vpop.permute.xlu0 %522 }
  0xde   : > { %v2845_v39 = vpop.permute.xlu2 %592 }
  0xdf   : > { %v538_v29 = vpop.permute.xlu1 %537  ;;  %v528_v30 = vpop.permute.xlu0 %527 }
  0xe6   : > { %v787_v43 = vpop.permute.xlu2 %786 }
  0xe7   : > { %v2837_v32 = vpop.permute.xlu1 %557  ;;  %v2839_v33 = vpop.permute.xlu0 %552 }
  0xee   : > { %v802_v55 = vpop.permute.xlu2 %801 }
  0xef   : > { %v573_v34 = vpop.permute.xlu1 %572  ;;  %v568_v35 = vpop.permute.xlu0 %567 }
  0xf6   : > { %v2851_v5 = vpop.permute.xlu2 %816 }
  0xf7   : > { %v2841_v37 = vpop.permute.xlu1 %587  ;;  %v2843_v38 = vpop.permute.xlu0 %582 }
  0xfe   : > { %v832_v21 = vpop.permute.xlu2 %831 }
  0xff   : > { %v782_v40 = vpop.permute.xlu1 %781  ;;  %v2847_v41 = vpop.permute.xlu0 %597 }
 0x103   : > { %v464_v42 = vpop.f32.mrf.mxu0 }
 0x104   : > { %v722_v44 = vpop.f32.mrf.mxu1  ;;  %v600_v50 = vmul.f32 %v523_v27, %v464_v42 }
 0x105   : > { %v859_v53 = vmul.f32 %v782_v40, %v722_v44 }
 0x107   : > { %v797_v45 = vpop.permute.xlu1 %796  ;;  %v792_v46 = vpop.permute.xlu0 %791 }
 0x109   : > { %v484_v47 = vpop.f32.mrf.mxu2 }
 0x10a   : > { %v742_v48 = vpop.f32.mrf.mxu3  ;;  %v608_v61 = vmul.f32 %v563_v31, %v484_v47 }
 0x10b   : > { %v466_v49 = vpop.f32.mrf.mxu0 }
 0x10c   : > { %v601_v51 = vmul.f32 %v528_v30, %v466_v49  ;;  %v724_v52 = vpop.f32.mrf.mxu1  ;;  %v847_v49 = vpop.permute.xlu2 %846 }
 0x10d   : > { %v860_v54 = vmul.f32 %v787_v43, %v724_v52 }
 0x10e   : > { %v1945_v56 = vpack.c.bf16 %v601_v51, %v600_v50 }
 0x10f   : > { %v1985_v57 = vpack.c.bf16 %v860_v54, %v859_v53  ;;  %v2849_v58 = vpop.permute.xlu1 %811  ;;  %v807_v59 = vpop.permute.xlu0 %806 }
 0x110   : > { %1946 = vst [vmem:[#allocation3] sm:$0xff] %v1945_v56  }
 0x111   : > { %1986 = vst [vmem:[#allocation3 + $0x40] sm:$0xff] %v1985_v57   ;;  %v486_v60 = vpop.f32.mrf.mxu2 }
 0x112   : > { %v609_v62 = vmul.f32 %v568_v35, %v486_v60  ;;  %v744_v63 = vpop.f32.mrf.mxu3 }
 0x113   : > { %v469_v0 = vpop.f32.mrf.mxu0 }
 0x114   : > { %v1965_v1 = vpack.c.bf16 %v609_v62, %v608_v61  ;;  %v727_v2 = vpop.f32.mrf.mxu1  ;;  %v602_v12 = vmul.f32 %v533_v26, %v469_v0 }
 0x115   : > { %v861_v15 = vmul.f32 %v792_v46, %v727_v2 }
 0x116   : > { %2097 = vst [vmem:[#allocation3 + $0x20] sm:$0xff] %v1965_v1  }
 0x117   : > { %v827_v3 = vpop.permute.xlu1 %826  ;;  %v822_v4 = vpop.permute.xlu0 %821 }
 0x118   : > { %v868_v6 = vmul.f32 %v827_v3, %v744_v63  ;;  %v867_v7 = vmul.f32 %v822_v4, %v742_v48 }
 0x119   : > { %v489_v8 = vpop.f32.mrf.mxu2 }
 0x11a   : > { %v2005_v9 = vpack.c.bf16 %v868_v6, %v867_v7  ;;  %v747_v10 = vpop.f32.mrf.mxu3  ;;  %v610_v22 = vmul.f32 %v573_v34, %v489_v8 }
 0x11b   : > { %v471_v11 = vpop.f32.mrf.mxu0  ;;  %v869_v27 = vmul.f32 %v832_v21, %v747_v10 }
 0x11c   : > { %2104 = vst [vmem:[#allocation3 + $0x60] sm:$0xff] %v2005_v9   ;;  %v603_v13 = vmul.f32 %v538_v29, %v471_v11  ;;  %v729_v14 = vpop.f32.mrf.mxu1 }
 0x11d   : > { %v862_v16 = vmul.f32 %v797_v45, %v729_v14 }
 0x11e   : > { %v1950_v17 = vpack.c.bf16 %v603_v13, %v602_v12 }
 0x11f   : > { %v1990_v18 = vpack.c.bf16 %v862_v16, %v861_v15  ;;  %v837_v19 = vpop.permute.xlu0 %836  ;;  %v842_v51 = vpop.permute.xlu1 %841 }
 0x120   : > { %2094 = vst [vmem:[#allocation3 + $0x8] sm:$0xff] %v1950_v17  }
 0x121   : > { %2101 = vst [vmem:[#allocation3 + $0x48] sm:$0xff] %v1990_v18   ;;  %v491_v20 = vpop.f32.mrf.mxu2 }
 0x122   : > { %v611_v23 = vmul.f32 %v578_v36, %v491_v20  ;;  %v749_v24 = vpop.f32.mrf.mxu3 }
 0x123   : > { %v870_v30 = vmul.f32 %v837_v19, %v749_v24  ;;  %v474_v31 = vpop.f32.mrf.mxu0 }
 0x124   : > { %v1970_v35 = vpack.c.bf16 %v611_v23, %v610_v22  ;;  %v732_v26 = vpop.f32.mrf.mxu1  ;;  %v604_v44 = vmul.f32 %v2833_v25, %v474_v31 }
 0x125   : > { %v2010_v40 = vpack.c.bf16 %v870_v30, %v869_v27  ;;  %v863_v47 = vmul.f32 %v802_v55, %v732_v26 }
 0x126   : > { %2098 = vst [vmem:[#allocation3 + $0x28] sm:$0xff] %v1970_v35  }
 0x127   : > { %2105 = vst [vmem:[#allocation3 + $0x68] sm:$0xff] %v2010_v40   ;;  %v857_v4 = vpop.permute.xlu1 %856  ;;  %v852_v7 = vpop.permute.xlu0 %851 }
 0x129   : > { %v494_v29 = vpop.f32.mrf.mxu2 }
 0x12a   : > { %v752_v42 = vpop.f32.mrf.mxu3  ;;  %v612_v52 = vmul.f32 %v2843_v38, %v494_v29 }
 0x12b   : > { %v476_v43 = vpop.f32.mrf.mxu0  ;;  %v871_v56 = vmul.f32 %v842_v51, %v752_v42 }
 0x12c   : > { %v605_v45 = vmul.f32 %v2835_v28, %v476_v43  ;;  %v734_v46 = vpop.f32.mrf.mxu1 }
 0x12d   : > { %v864_v34 = vmul.f32 %v807_v59, %v734_v46 }
 0x12e   : > { %v1955_v36 = vpack.c.bf16 %v605_v45, %v604_v44 }
 0x12f   : > { %v1995_v48 = vpack.c.bf16 %v864_v34, %v863_v47 }
 0x130   : > { %2095 = vst [vmem:[#allocation3 + $0x10] sm:$0xff] %v1955_v36  }
 0x131   : > { %2102 = vst [vmem:[#allocation3 + $0x50] sm:$0xff] %v1995_v48   ;;  %v496_v50 = vpop.f32.mrf.mxu2 }
 0x132   : > { %v613_v53 = vmul.f32 %v2841_v37, %v496_v50  ;;  %v754_v54 = vpop.f32.mrf.mxu3 }
 0x133   : > { %v872_v57 = vmul.f32 %v847_v49, %v754_v54  ;;  %v479_v25 = vpop.f32.mrf.mxu0 }
 0x134   : > { %v1975_v60 = vpack.c.bf16 %v613_v53, %v612_v52  ;;  %v737_v28 = vpop.f32.mrf.mxu1  ;;  %v606_v63 = vmul.f32 %v2839_v33, %v479_v25 }
 0x135   : > { %v2015_v61 = vpack.c.bf16 %v872_v57, %v871_v56  ;;  %v865_v38 = vmul.f32 %v2849_v58, %v737_v28 }
 0x136   : > { %2099 = vst [vmem:[#allocation3 + $0x30] sm:$0xff] %v1975_v60  }
 0x137   : > { %2106 = vst [vmem:[#allocation3 + $0x70] sm:$0xff] %v2015_v61  }
 0x139   : > { %v499_v55 = vpop.f32.mrf.mxu2 }
 0x13a   : > { %v757_v59 = vpop.f32.mrf.mxu3  ;;  %v614_v8 = vmul.f32 %v2845_v39, %v499_v55 }
 0x13b   : > { %v481_v62 = vpop.f32.mrf.mxu0  ;;  %v873_v33 = vmul.f32 %v852_v7, %v757_v59 }
 0x13c   : > { %v607_v0 = vmul.f32 %v2837_v32, %v481_v62  ;;  %v739_v1 = vpop.f32.mrf.mxu1 }
 0x13d   : > { %v866_v37 = vmul.f32 %v2851_v5, %v739_v1 }
 0x13e   : > { %v1960_v2 = vpack.c.bf16 %v607_v0, %v606_v63 }
 0x13f   : > { %v2000_v3 = vpack.c.bf16 %v866_v37, %v865_v38 }
 0x140   : > { %2096 = vst [vmem:[#allocation3 + $0x18] sm:$0xff] %v1960_v2  }
 0x141   : > { %2103 = vst [vmem:[#allocation3 + $0x58] sm:$0xff] %v2000_v3   ;;  %v501_v6 = vpop.f32.mrf.mxu2 }
 0x142   : > { %v615_v9 = vmul.f32 %v2847_v41, %v501_v6  ;;  %v759_v10 = vpop.f32.mrf.mxu3 }
 0x143   : > { %v874_v11 = vmul.f32 %v857_v4, %v759_v10 }
 0x144   : > { %v1980_v32 = vpack.c.bf16 %v615_v9, %v614_v8 }
 0x145   : > { %v2020_v12 = vpack.c.bf16 %v874_v11, %v873_v33 }
 0x146   : > { %2100 = vst [vmem:[#allocation3 + $0x38] sm:$0xff] %v1980_v32  }
 0x147   : > { %2107 = vst [vmem:[#allocation3 + $0x78] sm:$0xff] %v2020_v12  }
 0x148 PF: > { %p2156_p13 = pneg %p2617_p11 }
 0x14a   : > { %2405 = dma.done.wait (%p2156_p13), [#allocation5 + $0x1], 4096 }
 0x14b   : > { %2407 = vsyncadd (%p2156_p13), [#allocation5 + $0x1], 4294963200  ;;  %v2460_v58 = vmov 0   ;;  %s2866_s26 = sshll.u32 %s2438_s24, 7  ;;  %v1931_v5 = vld [vmem:[#allocation3 + $0x30] sm:$0xff]  ;;  %v1930_v15 = vld [vmem:[#allocation3 + $0x28] sm:$0xff] }
 0x14c   : > { %2268 = vset.pattern.permute.xlu0 %v2460_v58  ;;  %2269 = vset.pattern.permute.xlu1 %v2460_v58  ;;  %s2872_s8 = scalar_lea.vmem %s3103_s4, %s2866_s26  ;;  %v1939_v13 = vld [vmem:[#allocation3 + $0x70] sm:$0xff]  ;;  %v1938_v16 = vld [vmem:[#allocation3 + $0x68] sm:$0xff]  ;;  %v1929_v18 = vld [vmem:[#allocation3 + $0x20] sm:$0xff]  ;;  %s2881_s24 = scalar_lea.vmem [#allocation4], %s2866_s26 }
 0x14d   : > { %2270 = vset.pattern.permute.xlu2 %v2460_v58  ;;  %v1932_v39 = vld [vmem:[#allocation3 + $0x38] sm:$0xff]  ;;  %v970_v14 = vld [vmem:[%s2872_s8] sm:$0xff]  ;;  %v972_v17 = vld [vmem:[%s2872_s8 + $0x10] sm:$0xff]  ;;  %s916_s6 = sshra.s32 %s2866_s26, 3  ;;  %p1873_p0 = scmp.ge.s32.totalorder %s2442_s25, 2 }
 0x14e   : > { %v1940_v41 = vld [vmem:[#allocation3 + $0x78] sm:$0xff]  ;;  %1196 = vmatpush.bf16.msra.mxu0 %v1932_v39  ;;  %2138 = vmatpush.bf16.msra.mxu2 %v1932_v39  ;;  %v971_v19 = vld [vmem:[%s2872_s8 + $0x8] sm:$0xff]  ;;  %v1937_v20 = vld [vmem:[#allocation3 + $0x60] sm:$0xff]  ;;  %s2928_s30 = sshll.u32 %s916_s6, 2 }
 0x14f   : > { %1245 = vmatpush.bf16.msra.mxu1 %v1940_v41  ;;  %2146 = vmatpush.bf16.msra.mxu3 %v1940_v41  ;;  %v1928_v21 = vld [vmem:[#allocation3 + $0x18] sm:$0xff]  ;;  %v1927_v23 = vld [vmem:[#allocation3 + $0x10] sm:$0xff]  ;;  %v974_v30 = vld [vmem:[%s2872_s8 + $0x20] sm:$0xff]  ;;  %s2931_s11 = scalar_lea.vmem [#allocation3], %s2928_s30  ;;  %s1447_s27 = scalar_lea.vmem (!%p1873_p0), [#allocation2], %s2928_s30 }
 0x150   : > { %1296 = vperm.xlu0 %2268, %v970_v14   ;;  %1306 = vperm.xlu1 %2269, %v972_v17   ;;  %v1936_v22 = vld [vmem:[#allocation3 + $0x58] sm:$0xff]  ;;  %v976_v24 = vld [vmem:[%s2872_s8 + $0x30] sm:$0xff]  ;;  %v1926_v35 = vld [vmem:[#allocation3 + $0x8] sm:$0xff] }
 0x151   : > { %v973_v27 = vld [vmem:[%s2872_s8 + $0x18] sm:$0xff]  ;;  %v1935_v31 = vld [vmem:[#allocation3 + $0x50] sm:$0xff]  ;;  %1316 = vperm.xlu2 %2270, %v974_v30   ;;  %v1934_v26 = vld [vmem:[#allocation3 + $0x48] sm:$0xff] }
 0x152   : > { %1197 = vmatpush.bf16.msra.mxu0 %v1931_v5  ;;  %2139 = vmatpush.bf16.msra.mxu2 %v1931_v5  ;;  %v1925_v40 = vld [vmem:[#allocation3] sm:$0xff]  ;;  %v1910_v43 = vld [vmem:[%s2881_s24 + $0x4] sm:$0xf0]  ;;  %v977_v45 = vld [vmem:[%s2872_s8 + $0x38] sm:$0xff] }
 0x153   : > { %1246 = vmatpush.bf16.msra.mxu1 %v1939_v13  ;;  %2147 = vmatpush.bf16.msra.mxu3 %v1939_v13  ;;  %v1747_v29 = vld [vmem:[%s2881_s24] sm:$0xf]  ;;  %v1918_v46 = vld [vmem:[%s2881_s24 + $0x44] sm:$0xf0]  ;;  %v1909_v47 = vld [vmem:[%s2881_s24 + $0x4] sm:$0xf] }
 0x154   : > { %v1933_v42 = vld [vmem:[#allocation3 + $0x40] sm:$0xff]  ;;  %v979_v34 = vld [vmem:[%s2872_s8 + $0x48] sm:$0xff]  ;;  %v1748_v50 = vor.u32 %v1910_v43, %v1747_v29  ;;  %v980_v57 = vld [vmem:[%s2872_s8 + $0x50] sm:$0xff] }
 0x155   : > { %v1779_v44 = vld [vmem:[%s2881_s24 + $0x40] sm:$0xf]  ;;  %v1749_v36 = vld [vmem:[%s2881_s24 + $0x8] sm:$0xf0]  ;;  %v1917_v48 = vld [vmem:[%s2881_s24 + $0x44] sm:$0xf] }
 0x156   : > { %1198 = vmatpush.bf16.msra.mxu0 %v1930_v15  ;;  %2140 = vmatpush.bf16.msra.mxu2 %v1930_v15  ;;  %v1781_v49 = vld [vmem:[%s2881_s24 + $0x48] sm:$0xf0]  ;;  %v1780_v51 = vor.u32 %v1918_v46, %v1779_v44  ;;  %v1752_v52 = vor.u32 %v1909_v47, %v1749_v36  ;;  %v982_v54 = vld [vmem:[%s2872_s8 + $0x60] sm:$0xff]  ;;  %v1755_v25 = vld [vmem:[%s2881_s24 + $0x10] sm:$0xf] }
 0x157   : > { %1247 = vmatpush.bf16.msra.mxu1 %v1938_v16  ;;  %2148 = vmatpush.bf16.msra.mxu3 %v1938_v16  ;;  %v1784_v53 = vor.u32 %v1917_v48, %v1781_v49  ;;  %v975_v56 = vld [vmem:[%s2872_s8 + $0x28] sm:$0xff]  ;;  %v978_v60 = vld [vmem:[%s2872_s8 + $0x40] sm:$0xff]  ;;  %v1912_v28 = vld [vmem:[%s2881_s24 + $0x14] sm:$0xf0] }
 0x158   : > { %1301 = vperm.xlu0 %2268, %v971_v19   ;;  %1311 = vperm.xlu1 %2269, %v973_v27   ;;  %v1787_v61 = vld [vmem:[%s2881_s24 + $0x50] sm:$0xf]  ;;  %v983_v55 = vld [vmem:[%s2872_s8 + $0x68] sm:$0xff]  ;;  %v1920_v59 = vld [vmem:[%s2881_s24 + $0x54] sm:$0xf0]  ;;  %v1756_v37 = vor.u32 %v1912_v28, %v1755_v25 }
 0x159   : > { %1321 = vperm.xlu2 %2270, %v975_v56   ;;  %v1911_v62 = vld [vmem:[%s2881_s24 + $0x14] sm:$0xf]  ;;  %v985_v63 = vld [vmem:[%s2872_s8 + $0x78] sm:$0xff]  ;;  %v1788_v2 = vor.u32 %v1920_v59, %v1787_v61  ;;  %v1763_v8 = vld [vmem:[%s2881_s24 + $0x20] sm:$0xf] }
 0x15a   : > { %1199 = vmatpush.bf16.msra.mxu0 %v1929_v18  ;;  %2141 = vmatpush.bf16.msra.mxu2 %v1929_v18  ;;  %v1757_v0 = vld [vmem:[%s2881_s24 + $0x18] sm:$0xf0]  ;;  %v1919_v1 = vld [vmem:[%s2881_s24 + $0x54] sm:$0xf]  ;;  %v1914_v9 = vld [vmem:[%s2881_s24 + $0x24] sm:$0xf0] }
 0x15b   : > { %1248 = vmatpush.bf16.msra.mxu1 %v1937_v20  ;;  %2149 = vmatpush.bf16.msra.mxu3 %v1937_v20  ;;  %v1789_v38 = vld [vmem:[%s2881_s24 + $0x58] sm:$0xf0]  ;;  %v1760_v3 = vor.u32 %v1911_v62, %v1757_v0  ;;  %v984_v7 = vld [vmem:[%s2872_s8 + $0x70] sm:$0xff]  ;;  %v1795_v10 = vld [vmem:[%s2881_s24 + $0x60] sm:$0xf]  ;;  %v1764_v39 = vor.u32 %v1914_v9, %v1763_v8 }
 0x15c   : > { %v1792_v4 = vor.u32 %v1919_v1, %v1789_v38  ;;  %v981_v6 = vld [vmem:[%s2872_s8 + $0x58] sm:$0xff]  ;;  %v1922_v33 = vld [vmem:[%s2881_s24 + $0x64] sm:$0xf0]  ;;  %v1913_v11 = vld [vmem:[%s2881_s24 + $0x24] sm:$0xf] }
 0x15d   : > { %v1765_v32 = vld [vmem:[%s2881_s24 + $0x28] sm:$0xf0]  ;;  %v1921_v12 = vld [vmem:[%s2881_s24 + $0x64] sm:$0xf]  ;;  %v1796_v41 = vor.u32 %v1922_v33, %v1795_v10  ;;  %v1771_v14 = vld [vmem:[%s2881_s24 + $0x30] sm:$0xf] }
 0x15e   : > { %1200 = vmatpush.bf16.msra.mxu0 %v1928_v21  ;;  %2142 = vmatpush.bf16.msra.mxu2 %v1928_v21  ;;  %v1797_v58 = vld [vmem:[%s2881_s24 + $0x68] sm:$0xf0]  ;;  %v1768_v5 = vor.u32 %v1913_v11, %v1765_v32  ;;  %v1916_v15 = vld [vmem:[%s2881_s24 + $0x34] sm:$0xf0]  ;;  %v1803_v16 = vld [vmem:[%s2881_s24 + $0x70] sm:$0xf] }
 0x15f   : > { %1249 = vmatpush.bf16.msra.mxu1 %v1936_v22  ;;  %2150 = vmatpush.bf16.msra.mxu3 %v1936_v22  ;;  %v1800_v13 = vor.u32 %v1921_v12, %v1797_v58  ;;  %v1924_v17 = vld [vmem:[%s2881_s24 + $0x74] sm:$0xf0]  ;;  %v1915_v18 = vld [vmem:[%s2881_s24 + $0x34] sm:$0xf]  ;;  %v1773_v19 = vld [vmem:[%s2881_s24 + $0x38] sm:$0xf0]  ;;  %v1772_v22 = vor.u32 %v1916_v15, %v1771_v14 }
 0x160   : > { %1326 = vperm.xlu0 %2268, %v976_v24   ;;  %1331 = vperm.xlu1 %2269, %v977_v45   ;;  %v1923_v20 = vld [vmem:[%s2881_s24 + $0x74] sm:$0xf]  ;;  %v1805_v21 = vld [vmem:[%s2881_s24 + $0x78] sm:$0xf0]  ;;  %v1776_v24 = vor.u32 %v1915_v18, %v1773_v19  ;;  %v2111_v44 = vld [vmem:[%s2931_s11 + $0x20] sm:$0xff]  }
 0x161   : > { %1336 = vperm.xlu2 %2270, %v978_v60   ;;  %v1808_v27 = vor.u32 %v1923_v20, %v1805_v21  ;;  %v2040_v36 = vunpack.c.l.bf16 %v2111_v44  ;;  %v2112_v8 = vld [vmem:[%s2931_s11 + $0x28] sm:$0xff]  }
 0x162   : > { %1201 = vmatpush.bf16.msra.mxu0 %v1927_v23  ;;  %2143 = vmatpush.bf16.msra.mxu2 %v1927_v23  ;;  %v1804_v23 = vor.u32 %v1924_v17, %v1803_v16  ;;  %v2044_v58 = vunpack.c.l.bf16 %v2112_v8 }
 0x163   : > { %1250 = vmatpush.bf16.msra.mxu1 %v1935_v31  ;;  %2151 = vmatpush.bf16.msra.mxu3 %v1935_v31 }
 0x166   : > { %1202 = vmatpush.bf16.msra.mxu0 %v1926_v35  ;;  %2144 = vmatpush.bf16.msra.mxu2 %v1926_v35  ;;  %v2023_v35 = vld [vmem:[%s2931_s11] sm:$0xff]  }
 0x167   : > { %1251 = vmatpush.bf16.msra.mxu1 %v1934_v26  ;;  %2152 = vmatpush.bf16.msra.mxu3 %v1934_v26  ;;  %v2024_v29 = vunpack.c.l.bf16 %v2023_v35 }
 0x168   : > { %1341 = vperm.xlu0 %2268, %v979_v34   ;;  %1346 = vperm.xlu1 %2269, %v980_v57   ;;  %v2942_v34 = vld [vmem:[%s218_s12] ss:$0 sm:$0xff] }
 0x169   : > { %1351 = vperm.xlu2 %2270, %v981_v6  }
 0x16a   : > { %1203 = vmatpush.bf16.msra.mxu0 %v1925_v40  ;;  %2145 = vmatpush.bf16.msra.mxu2 %v1925_v40 }
 0x16b   : > { %1252 = vmatpush.bf16.msra.mxu1 %v1933_v42  ;;  %2153 = vmatpush.bf16.msra.mxu3 %v1933_v42 }
 0x16d   : > { %1204 = vmatmul.bf16.vlgmr.msra.gmra.mxu0 %v1748_v50  ;;  %1224 = vmatmul.bf16.vlgmr.msra.gmra.mxu2 %v1780_v51  ;;  %v2025_v50 = vunpack.c.h.bf16 %v2023_v35 }
 0x16e   : > { %1253 = vmatmul.bf16.vlgmr.msra.gmra.mxu1 %v1752_v52  ;;  %1273 = vmatmul.bf16.vlgmr.msra.gmra.mxu3 %v1784_v53 }
 0x170   : > { %1356 = vperm.xlu0 %2268, %v982_v54   ;;  %1361 = vperm.xlu1 %2269, %v983_v55   ;;  %v2108_v55 = vld [vmem:[%s2931_s11 + $0x8] sm:$0xff]  }
 0x171   : > { %1366 = vperm.xlu2 %2270, %v984_v7   ;;  %v2028_v38 = vunpack.c.l.bf16 %v2108_v55 }
 0x178   : > { %1371 = vperm.xlu0 %2268, %v985_v63   ;;  %v2041_v63 = vunpack.c.h.bf16 %v2111_v44 }
 0x17d   : > { %1209 = vmatmul.bf16.gmra.mxu0 %v1756_v37  ;;  %1229 = vmatmul.bf16.gmra.mxu2 %v1788_v2 }
 0x17e   : > { %1258 = vmatmul.bf16.gmra.mxu1 %v1760_v3  ;;  %1278 = vmatmul.bf16.gmra.mxu3 %v1792_v4 }
 0x18d   : > { %1214 = vmatmul.bf16.gmra.mxu0 %v1764_v39  ;;  %1234 = vmatmul.bf16.gmra.mxu2 %v1796_v41 }
 0x18e   : > { %1263 = vmatmul.bf16.gmra.mxu1 %v1768_v5  ;;  %1283 = vmatmul.bf16.gmra.mxu3 %v1800_v13  ;;  %v2029_v5 = vunpack.c.h.bf16 %v2108_v55 }
 0x19d   : > { %1219 = vmatmul.bf16.gmra.mxu0 %v1772_v22  ;;  %1239 = vmatmul.bf16.gmra.mxu2 %v1804_v23  ;;  %v2109_v22 = vld [vmem:[%s2931_s11 + $0x10] sm:$0xff]  }
 0x19e   : > { %1268 = vmatmul.bf16.gmra.mxu1 %v1776_v24  ;;  %1288 = vmatmul.bf16.gmra.mxu3 %v1808_v27  ;;  %v2045_v27 = vunpack.c.h.bf16 %v2112_v8 }
 0x1ab   : > { %v2926_v31 = vpop.permute.xlu2 %1316 }
 0x1b3   : > { %v2934_v42 = vpop.permute.xlu2 %1321 }
 0x1bb   : > { %v1337_v25 = vpop.permute.xlu2 %1336 }
 0x1c2   : > { %v1297_v30 = vpop.permute.xlu0 %1296  ;;  %v1307_v26 = vpop.permute.xlu1 %1306 }
 0x1ca   : > { %v1302_v40 = vpop.permute.xlu0 %1301  ;;  %v1312_v48 = vpop.permute.xlu1 %1311 }
 0x1d2   : > { %v2947_v53 = vpop.permute.xlu0 %1326  ;;  %v2953_v2 = vpop.permute.xlu1 %1331 }
 0x1da   : > { %v1342_v11 = vpop.permute.xlu0 %1341  ;;  %v1347_v18 = vpop.permute.xlu1 %1346 }
 0x1ea   : > { %v1205_v43 = vpop.f32.mrf.mxu0 }
 0x1eb   : > { %v1206_v45 = vadd.f32 %v2024_v29, %v1205_v43  ;;  %v1254_v46 = vpop.f32.mrf.mxu1 }
 0x1ed   : > { %v1255_v47 = vadd.f32 %v1254_v46, %v1206_v45  ;;  %v2113_v46 = vld [vmem:[%s2931_s11 + $0x30] sm:$0xff]  }
 0x1ef   : > { %v1374_v49 = vmul.f32 %v1297_v30, %v1255_v47 }
 0x1f0   : > { %v1225_v51 = vpop.f32.mrf.mxu2 }
 0x1f1   : > { %v2945_v52 = vadd.f32 %v2942_v34, %v1374_v49  ;;  %v1226_v54 = vadd.f32 %v2040_v36, %v1225_v51  ;;  %v1274_v56 = vpop.f32.mrf.mxu3 }
 0x1f2   : > { %v1207_v57 = vpop.f32.mrf.mxu0 }
 0x1f3   : > { %v1275_v60 = vadd.f32 %v1274_v56, %v1226_v54  ;;  %v1208_v28 = vadd.f32 %v2025_v50, %v1207_v57  ;;  %v1256_v61 = vpop.f32.mrf.mxu1  ;;  %v1352_v50 = vpop.permute.xlu2 %1351 }
 0x1f5   : > { %v1257_v59 = vadd.f32 %v1256_v61, %v1208_v28  ;;  %v1382_v62 = vmul.f32 %v1337_v25, %v1275_v60  ;;  %v2033_v25 = vunpack.c.h.bf16 %v2109_v22 }
 0x1f7   : > { %v1375_v0 = vmul.f32 %v1302_v40, %v1257_v59  ;;  %v2951_v1 = vadd.f32 %v2942_v34, %v1382_v62 }
 0x1f8   : > { %v1227_v37 = vpop.f32.mrf.mxu2 }
 0x1f9   : > { %v2956_v3 = vadd.f32 %v2942_v34, %v1375_v0  ;;  %v1228_v4 = vadd.f32 %v2041_v63, %v1227_v37  ;;  %v1276_v6 = vpop.f32.mrf.mxu3  ;;  %v2110_v37 = vld [vmem:[%s2931_s11 + $0x18] sm:$0xff]  }
 0x1fa   : > { %v1210_v7 = vpop.f32.mrf.mxu0 }
 0x1fb   : > { %v1277_v9 = vadd.f32 %v1276_v6, %v1228_v4  ;;  %v1211_v10 = vadd.f32 %v2028_v38, %v1210_v7  ;;  %v1259_v33 = vpop.f32.mrf.mxu1  ;;  %v1357_v38 = vpop.permute.xlu0 %1356  ;;  %v2049_v7 = vunpack.c.h.bf16 %v2113_v46 }
 0x1fd   : > { %v1383_v32 = vmul.f32 %v1342_v11, %v1277_v9  ;;  %v1260_v12 = vadd.f32 %v1259_v33, %v1211_v10  ;;  %v2036_v9 = vunpack.c.l.bf16 %v2110_v37 }
 0x1ff   : > { %v2960_v39 = vadd.f32 %v2942_v34, %v1383_v32  ;;  %v1376_v41 = vmul.f32 %v1307_v26, %v1260_v12  ;;  %v2032_v26 = vunpack.c.l.bf16 %v2109_v22 }
 0x200   : > { %v1230_v13 = vpop.f32.mrf.mxu2 }
 0x201   : > { %v2963_v14 = vadd.f32 %v2942_v34, %v1376_v41  ;;  %v1231_v15 = vadd.f32 %v2044_v58, %v1230_v13  ;;  %v1279_v16 = vpop.f32.mrf.mxu3  ;;  %v2114_v58 = vld [vmem:[%s2931_s11 + $0x38] sm:$0xff]  }
 0x202   : > { %v1212_v17 = vpop.f32.mrf.mxu0 }
 0x203   : > { %v1280_v19 = vadd.f32 %v1279_v16, %v1231_v15  ;;  %v1213_v20 = vadd.f32 %v2029_v5, %v1212_v17  ;;  %v1261_v21 = vpop.f32.mrf.mxu1  ;;  %v1362_v15 = vpop.permute.xlu1 %1361 }
 0x205   : > { %v1262_v23 = vadd.f32 %v1261_v21, %v1213_v20  ;;  %v1384_v24 = vmul.f32 %v1347_v18, %v1280_v19  ;;  %v2052_v18 = vunpack.c.l.bf16 %v2114_v58  ;;  %v2037_v20 = vunpack.c.h.bf16 %v2110_v37 }
 0x207   : > { %v1377_v30 = vmul.f32 %v1312_v48, %v1262_v23  ;;  %v2967_v35 = vadd.f32 %v2942_v34, %v1384_v24  ;;  %v2048_v48 = vunpack.c.l.bf16 %v2113_v46  ;;  %v2053_v46 = vunpack.c.h.bf16 %v2114_v58 }
 0x208   : > { %v1232_v40 = vpop.f32.mrf.mxu2 }
 0x209   : > { %v2970_v29 = vadd.f32 %v2942_v34, %v1377_v30  ;;  %v1233_v43 = vadd.f32 %v2045_v27, %v1232_v40  ;;  %v1281_v44 = vpop.f32.mrf.mxu3  ;;  %v1367_v40 = vpop.permute.xlu2 %1366 }
 0x20a   : > { %v1215_v45 = vpop.f32.mrf.mxu0 }
 0x20b   : > { %v1282_v47 = vadd.f32 %v1281_v44, %v1233_v43  ;;  %v1216_v36 = vadd.f32 %v2032_v26, %v1215_v45  ;;  %v1264_v49 = vpop.f32.mrf.mxu1 }
 0x20d   : > { %v1385_v51 = vmul.f32 %v1352_v50, %v1282_v47  ;;  %v1265_v54 = vadd.f32 %v1264_v49, %v1216_v36 }
 0x20f   : > { %v2974_v56 = vadd.f32 %v2942_v34, %v1385_v51  ;;  %v1378_v57 = vmul.f32 %v2926_v31, %v1265_v54 }
 0x210   : > { %v1235_v60 = vpop.f32.mrf.mxu2 }
 0x211   : > { %v2978_v28 = vadd.f32 %v2942_v34, %v1378_v57  ;;  %v1236_v61 = vadd.f32 %v2048_v48, %v1235_v60  ;;  %v1284_v55 = vpop.f32.mrf.mxu3  ;;  %v1372_v48 = vpop.permute.xlu0 %1371 }
 0x212   : > { %v1217_v59 = vpop.f32.mrf.mxu0 }
 0x213   : > { %v1285_v62 = vadd.f32 %v1284_v55, %v1236_v61  ;;  %v1218_v63 = vadd.f32 %v2033_v25, %v1217_v59  ;;  %v1266_v0 = vpop.f32.mrf.mxu1 }
 0x215   : > { %v1386_v4 = vmul.f32 %v1357_v38, %v1285_v62  ;;  %v1267_v6 = vadd.f32 %v1266_v0, %v1218_v63 }
 0x217   : > { %v2982_v8 = vadd.f32 %v2942_v34, %v1386_v4  ;;  %v1379_v31 = vmul.f32 %v2934_v42, %v1267_v6 }
 0x218   : > { %v1237_v10 = vpop.f32.mrf.mxu2 }
 0x219   : > { %v2986_v33 = vadd.f32 %v2942_v34, %v1379_v31  ;;  %v1238_v11 = vadd.f32 %v2049_v7, %v1237_v10  ;;  %v1286_v32 = vpop.f32.mrf.mxu3 }
 0x21a   : > { %v1220_v12 = vpop.f32.mrf.mxu0 }
 0x21b   : > { %v1287_v41 = vadd.f32 %v1286_v32, %v1238_v11  ;;  %v1221_v5 = vadd.f32 %v2036_v9, %v1220_v12  ;;  %v1269_v13 = vpop.f32.mrf.mxu1 }
 0x21d   : > { %v1387_v16 = vmul.f32 %v1362_v15, %v1287_v41  ;;  %v1270_v17 = vadd.f32 %v1269_v13, %v1221_v5 }
 0x21f   : > { %v2990_v19 = vadd.f32 %v2942_v34, %v1387_v16  ;;  %v1380_v42 = vmul.f32 %v2947_v53, %v1270_v17 }
 0x220   : > { %v1240_v21 = vpop.f32.mrf.mxu2 }
 0x221   : > { %v2994_v22 = vadd.f32 %v2942_v34, %v1380_v42  ;;  %v1241_v23 = vadd.f32 %v2052_v18, %v1240_v21  ;;  %v1289_v24 = vpop.f32.mrf.mxu3 }
 0x222   : > { %v1222_v27 = vpop.f32.mrf.mxu0 }
 0x223   : > { %v1290_v30 = vadd.f32 %v1289_v24, %v1241_v23  ;;  %v1223_v26 = vadd.f32 %v2037_v20, %v1222_v27  ;;  %v1271_v43 = vpop.f32.mrf.mxu1 }
 0x225   : > { %v1388_v44 = vmul.f32 %v1367_v40, %v1290_v30  ;;  %v1272_v45 = vadd.f32 %v1271_v43, %v1223_v26 }
 0x227   : > { %v1408_v47 = vadd.f32 %v2942_v34, %v1388_v44  ;;  %v1381_v36 = vmul.f32 %v2953_v2, %v1272_v45 }
 0x228   : > { %v1242_v53 = vpop.f32.mrf.mxu2 }
 0x229   : > { %v1401_v49 = vadd.f32 %v2942_v34, %v1381_v36  ;;  %v1243_v50 = vadd.f32 %v2053_v46, %v1242_v53  ;;  %v1291_v51 = vpop.f32.mrf.mxu3 }
 0x22b   : > { %v1292_v54 = vadd.f32 %v1291_v51, %v1243_v50  ;;  %1413 = sbr.rel (%p1873_p0) target bundleno = 572 (0x23c), region = 75 }
 0x22d   : > { %v1389_v57 = vmul.f32 %v1372_v48, %v1292_v54 }
 0x22f   : > { %v1409_v25 = vadd.f32 %v2942_v34, %v1389_v57 }
 0x230   : > { %v1414_v60 = vmax.f32 %v2945_v52, 0.0  ;;  %v1415_v61 = vmax.f32 %v2956_v3, 0.0  ;;  %v1416_v2 = vmax.f32 %v2963_v14, 0.0  ;;  %v1417_v55 = vmax.f32 %v2970_v29, 0.0 }
 0x231   : > { %v1418_v59 = vmax.f32 %v2978_v28, 0.0  ;;  %v1419_v62 = vmax.f32 %v2986_v33, 0.0  ;;  %v1420_v63 = vmax.f32 %v2994_v22, 0.0  ;;  %v1421_v0 = vmax.f32 %v1401_v49, 0.0 }
 0x232   : > { %v2057_v34 = vpack.c.bf16 %v1415_v61, %v1414_v60  ;;  %v2062_v38 = vpack.c.bf16 %v1417_v55, %v1416_v2  ;;  %v1422_v37 = vmax.f32 %v2951_v1, 0.0  ;;  %v1423_v4 = vmax.f32 %v2960_v39, 0.0 }
 0x233   : > { %v2067_v6 = vpack.c.bf16 %v1419_v62, %v1418_v59  ;;  %v2072_v7 = vpack.c.bf16 %v1421_v0, %v1420_v63  ;;  %v1424_v31 = vmax.f32 %v2967_v35, 0.0  ;;  %v1425_v9 = vmax.f32 %v2974_v56, 0.0 }
 0x234   : > { %2058 = vst [vmem:[%s1447_s27] sm:$0xff] %v2057_v34   ;;  %v2077_v10 = vpack.c.bf16 %v1423_v4, %v1422_v37  ;;  %v1426_v11 = vmax.f32 %v2982_v8, 0.0  ;;  %v1427_v32 = vmax.f32 %v2990_v19, 0.0  ;;  %v1428_v12 = vmax.f32 %v1408_v47, 0.0 }
 0x235   : > { %2115 = vst [vmem:[%s1447_s27 + $0x8] sm:$0xff] %v2062_v38   ;;  %v2082_v58 = vpack.c.bf16 %v1425_v9, %v1424_v31  ;;  %v1429_v41 = vmax.f32 %v1409_v25, 0.0 }
 0x236   : > { %2116 = vst [vmem:[%s1447_s27 + $0x10] sm:$0xff] %v2067_v6   ;;  %v2087_v5 = vpack.c.bf16 %v1427_v32, %v1426_v11 }
 0x237   : > { %2117 = vst [vmem:[%s1447_s27 + $0x18] sm:$0xff] %v2072_v7   ;;  %v2092_v13 = vpack.c.bf16 %v1429_v41, %v1428_v12 }
 0x238   : > { %2118 = vst [vmem:[%s1447_s27 + $0x20] sm:$0xff] %v2077_v10  }
 0x239   : > { %2119 = vst [vmem:[%s1447_s27 + $0x28] sm:$0xff] %v2082_v58  }
 0x23a   : > { %2120 = vst [vmem:[%s1447_s27 + $0x30] sm:$0xff] %v2087_v5  }
 0x23b   : > { %2121 = vst [vmem:[%s1447_s27 + $0x38] sm:$0xff] %v2092_v13  }
 0x23c PF: > { %p1875_p1 = scmp.ne.s32.totalorder %s2442_s25, 2 }
 0x23e   : > { %1467 = sbr.rel (%p1875_p1) target bundleno = 595 (0x253), region = 79 }
 0x243   : > { %1468 = vst [vmem:[%s2625_s15] sm:$0xff] %v2945_v52 }
 0x244   : > { %1469 = vst [vmem:[%s2625_s15 + $0x8] sm:$0xff] %v2956_v3 }
 0x245   : > { %1470 = vst [vmem:[%s2625_s15 + $0x10] sm:$0xff] %v2963_v14 }
 0x246   : > { %1471 = vst [vmem:[%s2625_s15 + $0x18] sm:$0xff] %v2970_v29 }
 0x247   : > { %1472 = vst [vmem:[%s2625_s15 + $0x20] sm:$0xff] %v2978_v28 }
 0x248   : > { %1473 = vst [vmem:[%s2625_s15 + $0x28] sm:$0xff] %v2986_v33 }
 0x249   : > { %1474 = vst [vmem:[%s2625_s15 + $0x30] sm:$0xff] %v2994_v22 }
 0x24a   : > { %1475 = vst [vmem:[%s2625_s15 + $0x38] sm:$0xff] %v1401_v49 }
 0x24b   : > { %1476 = vst [vmem:[%s2625_s15 + $0x40] sm:$0xff] %v2951_v1 }
 0x24c   : > { %1477 = vst [vmem:[%s2625_s15 + $0x48] sm:$0xff] %v2960_v39 }
 0x24d   : > { %1478 = vst [vmem:[%s2625_s15 + $0x50] sm:$0xff] %v2967_v35 }
 0x24e   : > { %1479 = vst [vmem:[%s2625_s15 + $0x58] sm:$0xff] %v2974_v56 }
 0x24f   : > { %1480 = vst [vmem:[%s2625_s15 + $0x60] sm:$0xff] %v2982_v8 }
 0x250   : > { %1481 = vst [vmem:[%s2625_s15 + $0x68] sm:$0xff] %v2990_v19 }
 0x251   : > { %1482 = vst [vmem:[%s2625_s15 + $0x70] sm:$0xff] %v1408_v47 }
 0x252   : > { %1483 = vst [vmem:[%s2625_s15 + $0x78] sm:$0xff] %v1409_v25 }
 0x253 PF: > { %s1496_s9 = scalar_lea.hbm %s3104_s5, %s2866_s26  ;;  %s1497_s23 = sshll.u32 %s2625_s15, 4  ;;  %s1498_s23 = int_to_ptr.vmem [resolvable:$true] %s1497_s23 }
 0x254   : > { %s1499_s13 = sshll.u32 %s1496_s9, 4  ;;  %s3122_s17 = sand.u32 1, %s2418_s19   ;;  %s1500_s13 = int_to_ptr.hbm [resolvable:$true] %s1499_s13 }
 0x255   : > { %s1485_s29 = scalar_lea.sflag [#allocation8], %s3122_s17  ;;  %s2340_s8 = sshra.s32 %s1500_s13, 4  ;;  %s2341_s8 = int_to_ptr.hbm [resolvable:$true] %s2340_s8 }
 0x256   : > { %s2342_s24 = scalar_lea.hbm %s2341_s8, 128  ;;  %s2346_s11 = scalar_lea.hbm %s3104_s5, 256 }
 0x257   : > { %p2343_p4 = scmp.ne.s32.totalorder %s2341_s8, %s2342_s24  ;;  %p2347_p8 = scmp.lt.s32.totalorder %s2341_s8, %s3104_s5 }
 0x258   : > { %p2348_p3 = scmp.lt.s32.totalorder %s2346_s11, %s2342_s24 }
 0x259   : > { %p2344_p5 = pnand %p2343_p4, %p2581_p12 }
 0x25a   : > { %p2349_p9 = por %p2348_p3, %p2347_p8 }
 0x25b   : > { %p2345_p6 = pneg %p2344_p5 }
 0x25d   : > { %p2350_p10 = pnand %p2349_p9, %p2345_p6 }
 0x25f   : > { %2353 = shalt.err (!%p2350_p10)
}
 0x260   : > { %s2461_s15 = smov 128   ;;  %s2462_s26 = smov 8  }
 0x261   : > { %2158 = dma.vmem_to_hbm [thread:$0]  (%p2581_p12), %s1498_s23, 2048, %s1500_s13, %s1485_s29, %s2461_s15, %s2461_s15, %s2462_s26  }
 0x262 PF: > { %p2169_p11 = scmp.ge.s32.totalorder %s2454_s28, 2  ;;  %s1514_s27 = sand.u32 1, %s2414_s18  }
 0x263   : > { %s1515_s25 = scalar_lea.sflag [#allocation8], %s1514_s27 }
 0x264   : > { %p2165_p7 = pnand %p2169_p11, %p2589_p2 }
 0x266   : > { %p2166_p13 = pneg %p2165_p7 }
 0x268   : > { %2409 = dma.done.wait (%p2166_p13), %s1515_s25, 2048  }
 0x269   : > { %2411 = vsyncadd (%p2166_p13), %s1515_s25, 4294965248  ;;  %s21_s28 = sadd.s32 1, %s2454_s28   ;;  %s3123_s16 = sld [smem:[#allocation19_spill]] }
 0x26a   : > { %p18_p0 = scmp.ge.s32.totalorder %s21_s28, 8   ;;  %s3124_s23 = sld [smem:[#allocation24_spill]] }
 0x26b   : > { %s3125_s24 = sld [smem:[#allocation20_spill]]  ;;  %s3129_s18 = smov %s2418_s19 }
 0x26c   : > { %s3126_s25 = sld [smem:[#allocation21_spill]]  ;;  %s3130_s19 = smov %s2422_s20 }
 0x26d   : > { %s3127_s26 = sld [smem:[#allocation22_spill]]  ;;  %s3131_s20 = smov %s2576_s14 }
 0x26e   : > { %s3128_s27 = sld [smem:[#allocation23_spill]]  ;;  %s3132_s21 = smov %s2430_s22 }
 0x26f   : > { %s3133_s22 = smov %s3123_s16  ;;  %20 = sbr.rel (!%p18_p0) target bundleno = 9 (0x9), region = 137 }
 0x274   :  { %1521 = vsyncpa [#allocation7], 1 }
 0x275   :  { %1523 = vsyncpa [#allocation7 + $0x1], 1 }
 0x276   :  { %1524 = vsyncpa [#allocation8], 1 }
 0x277   :  { %1526 = vsyncpa [#allocation8 + $0x1], 1 }
 0x278   :  { %1527 = vsyncmov [#allocation5] }
 0x27b   :  { %s1528_s14 = vpop.sfrf %1527 }
 0x27c   :  { %p1881_p12 = scmp.ne.s32.totalorder %s1528_s14, 0 }
 0x27e   :  { %1532 = shalt.err (%p1881_p12)  }
 0x27f   :  { %1534 = vsyncmov [#allocation5 + $0x1] }
 0x282   :  { %s1535_s12 = vpop.sfrf %1534 }
 0x283   :  { %p1882_p2 = scmp.ne.s32.totalorder %s1535_s12, 0 }
 0x285   :  { %1539 = shalt.err (%p1882_p2)  }

</bundles_post_ra>
